<compile_context>
chip_gen: v5e
topology: v5e:2x2
jax: 0.10.0
libtpu: 0.0.40
codegen_flags: <defaults>
</compile_context>

<pallas_src>
import jax
import jax.numpy as jnp
import numpy as np
from jax import lax
from jax.experimental import pallas as pl
from jax.experimental.pallas import tpu as pltpu


# ------------------------------ Pallas kernel ------------------------------

def _lenet_kernel(x_ref, pad_ref, a1_ref, b1_ref, p1r_ref, p1c_ref,
                  a2_ref, b2_ref, p2r_ref, p2c_ref,
                  wf1_ref, bf1_ref, wf2_ref, bf2_ref, wf3_ref, bf3_ref,
                  out_ref):
    f32 = jnp.float32

    def mm(a, w):
        # Conv/FC matmul: cast the (tiny) activation tile to the weight dtype
        # (bf16 by default -> native MXU path), accumulate in f32.
        return jnp.dot(a.astype(w.dtype), w, preferred_element_type=f32)

    def sel(a, b):
        # Exact 0/1 padding / pooling-decimation matmuls stay f32.
        return jnp.dot(a, b, preferred_element_type=f32)

    # ---- in-kernel zero padding (rows; columns are folded into A1) --------
    x = x_ref[0]                                     # (28, 28)
    xr = sel(pad_ref[...], x)                        # (32, 28): rows 2..29 = x

    # ---- conv1 (1->6, 5x5, pad 2) + ReLU: 5 row-shifted banded matmuls ----
    acc1 = mm(xr[0:28, :], a1_ref[0])
    for ky in range(1, 5):
        acc1 = acc1 + mm(xr[ky:ky + 28, :], a1_ref[ky])
    h1 = jnp.maximum(acc1 + b1_ref[...], 0.0)        # (28, 168) cols = (w, c)

    # ---- pool1 2x2/2: adjacent max + exact 0/1 decimation ------------------
    t1 = jnp.maximum(h1[0:27, :], h1[1:28, :])       # (27, 168)
    g1h = sel(p1r_ref[...], t1)                      # (14, 168)
    u1 = jnp.maximum(g1h[:, 0:162], g1h[:, 6:168])   # (14, 162)
    g1 = sel(u1, p1c_ref[...])                       # (14, 84)  cols = (w, c)

    # ---- conv2 (6->16, 5x5, valid) + ReLU ----------------------------------
    acc2 = mm(g1[0:10, :], a2_ref[0])
    for ky in range(1, 5):
        acc2 = acc2 + mm(g1[ky:ky + 10, :], a2_ref[ky])
    h2 = jnp.maximum(acc2 + b2_ref[...], 0.0)        # (10, 160) cols = (w, c)

    # ---- pool2 --------------------------------------------------------------
    t2 = jnp.maximum(h2[0:9, :], h2[1:10, :])        # (9, 160)
    g2h = sel(p2r_ref[...], t2)                      # (5, 160)
    u2 = jnp.maximum(g2h[:, 0:144], g2h[:, 16:160])  # (5, 144)
    g2 = sel(u2, p2c_ref[...])                       # (5, 80) rows=h, cols=(w,c)

    # ---- fc1: contract (h, w, c) -> 120 as a sum over the 5 pooled rows ----
    accf = mm(g2[0:1, :], wf1_ref[0])
    for h in range(1, 5):
        accf = accf + mm(g2[h:h + 1, :], wf1_ref[h])
    z1 = jnp.maximum(accf + bf1_ref[...], 0.0)       # (1, 120)

    # ---- fc2 + ReLU, fc3 ----------------------------------------------------
    z2 = jnp.maximum(mm(z1, wf2_ref[...]) + bf2_ref[...], 0.0)   # (1, 84)
    out_ref[0] = mm(z2, wf3_ref[...]) + bf3_ref[...]             # (1, 10)


# ------------------------- wrapper / parameter prep -------------------------

_CONST_NAMES = ("Pad", "A1", "b1row", "P1r", "P1c", "A2", "b2row", "P2r",
                "P2c", "Wf1", "bf1row", "Wf2", "bf2row", "Wf3", "bf3row")


def lenet_forward(x_nchw, prep):
    """x_nchw: (B, 1, 28, 28) float32; prep: output of prepare_params()."""
    B = x_nchw.shape[0]
    x3d = x_nchw.reshape(B, 28, 28)            # drop the channel dim (free)
    consts = [prep[n] for n in _CONST_NAMES]

    def const_spec(a):
        nd = a.ndim
        return pl.BlockSpec(a.shape, lambda b, _nd=nd: (0,) * _nd)

    in_specs = ([pl.BlockSpec((1, 28, 28), lambda b: (b, 0, 0))]
                + [const_spec(a) for a in consts])
    out_specs = pl.BlockSpec((1, 1, 10), lambda b: (b, 0, 0))

    # MACs actually issued per image (banded weights include structural zeros;
    # MXU has slack -- this is a scheduling hint for XLA, not a target).
    macs = (32 * 28 * 28 + 5 * 28 * 28 * 168 + 14 * 27 * 168 + 14 * 162 * 84
            + 5 * 10 * 84 * 160 + 5 * 9 * 160 + 5 * 144 * 80
            + 5 * 80 * 120 + 120 * 84 + 84 * 10)
    bytes_accessed = int(sum(a.size * a.dtype.itemsize for a in consts)
                         + x3d.size * x3d.dtype.itemsize + B * 10 * 4)
    cost = pl.CostEstimate(flops=2 * macs * B, transcendentals=0,
                           bytes_accessed=bytes_accessed)

    out = pl.pallas_call(
        _lenet_kernel,
        grid=(B,),
        out_shape=jax.ShapeDtypeStruct((B, 1, 10), jnp.float32),
        in_specs=in_specs,
        out_specs=out_specs,
        compiler_params=pltpu.CompilerParams(
            dimension_semantics=("parallel",)),
        cost_estimate=cost,
    )(x3d, *consts)
    return out.reshape(B, 10)


def prepare_params(params, mm_dtype=jnp.bfloat16):
    """One-time, batch-independent re-layout of PyTorch-style LeNet params
    into the structured matrices the fused kernel consumes.  Matmul weights
    are stored in mm_dtype (bf16 default); 0/1 selectors & biases stay f32."""
    w1 = np.asarray(params["w1"], np.float32)    # (6, 1, 5, 5)
    b1 = np.asarray(params["b1"], np.float32)
    w2 = np.asarray(params["w2"], np.float32)    # (16, 6, 5, 5)
    b2 = np.asarray(params["b2"], np.float32)
    fw1 = np.asarray(params["fw1"], np.float32)  # (120, 400)
    fb1 = np.asarray(params["fb1"], np.float32)
    fw2 = np.asarray(params["fw2"], np.float32)  # (84, 120)
    fb2 = np.asarray(params["fb2"], np.float32)
    fw3 = np.asarray(params["fw3"], np.float32)  # (10, 84)
    fb3 = np.asarray(params["fb3"], np.float32)

    # In-kernel row padding: xr = Pad @ x puts x at rows 2..29 of a 32-row
    # zero canvas (exact 0/1 matmul).
    Pad = np.zeros((32, 28), np.float32)
    for r in range(28):
        Pad[r + 2, r] = 1.0

    # conv1 banded weights per ky tap, 2-column zero padding folded in:
    # A1[ky, iw, ow*6 + o] = w1[o, 0, ky, kx], iw = ow + kx - 2 (drop OOB).
    A1 = np.zeros((5, 28, 28 * 6), np.float32)
    for ky in range(5):
        for kx in range(5):
            for ow in range(28):
                iw = ow + kx - 2
                if 0 <= iw < 28:
                    A1[ky, iw, ow * 6:(ow + 1) * 6] = w1[:, 0, ky, kx]

    # conv2 banded weights (valid conv):
    # A2[ky, iw*6 + c, ow*16 + o] = w2[o, c, ky, kx], iw = ow + kx.
    A2 = np.zeros((5, 14 * 6, 10 * 16), np.float32)
    for ky in range(5):
        for kx in range(5):
            blk = w2[:, :, ky, kx].T             # (6, 16) = [c, o]
            for ow in range(10):
                iw = ow + kx
                A2[ky, iw * 6:(iw + 1) * 6, ow * 16:(ow + 1) * 16] = blk

    # Per-image 2x2 max-pool decimation selectors (batch independent).
    P1r = np.zeros((14, 27), np.float32)
    for ph in range(14):
        P1r[ph, 2 * ph] = 1.0
    P1c = np.zeros((27 * 6, 14 * 6), np.float32)
    for pw in range(14):
        for c in range(6):
            P1c[(2 * pw) * 6 + c, pw * 6 + c] = 1.0
    P2r = np.zeros((5, 9), np.float32)
    for ph in range(5):
        P2r[ph, 2 * ph] = 1.0
    P2c = np.zeros((9 * 16, 5 * 16), np.float32)
    for pw in range(5):
        for o in range(16):
            P2c[(2 * pw) * 16 + o, pw * 16 + o] = 1.0

    # fc1 weight: PyTorch flatten order (c, h, w) -> kernel order (h, w, c),
    # pre-transposed and split per pooled row: Wf1[h, w*16+c, j].
    Wf1 = (fw1.reshape(120, 16, 5, 5).transpose(0, 2, 3, 1)
              .reshape(120, 400).T.reshape(5, 80, 120))

    mm_mats = {"A1": A1, "A2": A2, "Wf1": np.ascontiguousarray(Wf1),
               "Wf2": np.ascontiguousarray(fw2.T),
               "Wf3": np.ascontiguousarray(fw3.T)}
    exact = {"Pad": Pad, "P1r": P1r, "P1c": P1c, "P2r": P2r, "P2c": P2c,
             "b1row": np.tile(b1, 28).reshape(1, 28 * 6),
             "b2row": np.tile(b2, 10).reshape(1, 10 * 16),
             "bf1row": fb1.reshape(1, 120),
             "bf2row": fb2.reshape(1, 84),
             "bf3row": fb3.reshape(1, 10)}
    prep = {k: jnp.asarray(v, mm_dtype) for k, v in mm_mats.items()}
    prep.update({k: jnp.asarray(v, jnp.float32) for k, v in exact.items()})
    return prep


def init_params(key):
    ks = jax.random.split(key, 10)
    s = 0.1
    return {
        "w1":  s * jax.random.normal(ks[0], (6, 1, 5, 5), jnp.float32),
        "b1":  s * jax.random.normal(ks[1], (6,), jnp.float32),
        "w2":  s * jax.random.normal(ks[2], (16, 6, 5, 5), jnp.float32),
        "b2":  s * jax.random.normal(ks[3], (16,), jnp.float32),
        "fw1": s * jax.random.normal(ks[4], (120, 400), jnp.float32),
        "fb1": s * jax.random.normal(ks[5], (120,), jnp.float32),
        "fw2": s * jax.random.normal(ks[6], (84, 120), jnp.float32),
        "fb2": s * jax.random.normal(ks[7], (84,), jnp.float32),
        "fw3": s * jax.random.normal(ks[8], (10, 84), jnp.float32),
        "fb3": s * jax.random.normal(ks[9], (10,), jnp.float32),
    }


def lenet_reference(x, p):
    """Pure-JAX/XLA reference with PyTorch-identical semantics (self-check)."""
    dn = ("NCHW", "OIHW", "NCHW")
    y = lax.conv_general_dilated(x, p["w1"], (1, 1), ((2, 2), (2, 2)),
                                 dimension_numbers=dn)
    y = jnp.maximum(y + p["b1"][None, :, None, None], 0.0)
    y = lax.reduce_window(y, -jnp.inf, lax.max, (1, 1, 2, 2), (1, 1, 2, 2),
                          "VALID")
    y = lax.conv_general_dilated(y, p["w2"], (1, 1), "VALID",
                                 dimension_numbers=dn)
    y = jnp.maximum(y + p["b2"][None, :, None, None], 0.0)
    y = lax.reduce_window(y, -jnp.inf, lax.max, (1, 1, 2, 2), (1, 1, 2, 2),
                          "VALID")
    y = y.reshape(y.shape[0], -1)
    y = jnp.maximum(y @ p["fw1"].T + p["fb1"], 0.0)
    y = jnp.maximum(y @ p["fw2"].T + p["fb2"], 0.0)
    return y @ p["fw3"].T + p["fb3"]


if __name__ == "__main__":
    key = jax.random.PRNGKey(0)
    kx, kp = jax.random.split(key)
    # LeNet expects MNIST-sized input: (batch, 1, 28, 28), small batch of 2.
    x = jax.random.normal(kx, (2, 1, 28, 28), jnp.float32)
    params = init_params(kp)
    prep = prepare_params(params)      # batch-independent, bf16 matmul weights

    fwd = jax.jit(lenet_forward)
    out = jax.block_until_ready(fwd(x, prep))
    assert out.shape == (2, 10) and out.dtype == jnp.float32

    ref = jax.block_until_ready(lenet_reference(x, params))
    max_diff = float(jnp.max(jnp.abs(out - ref)))
    assert jnp.allclose(out, ref, atol=3e-2, rtol=3e-2), (
        f"mismatch vs reference, max |diff| = {max_diff}")
    print("KERNEL_OK")
</pallas_src>

<mosaic_0001>
module attributes {stable_mosaic.version = 11 : i64} {
  func.func @_lenet_kernel(%arg0: i32, %arg1: memref<1x28x28xf32, #tpu.memory_space<vmem>>, %arg2: memref<32x28xf32, #tpu.memory_space<vmem>>, %arg3: memref<5x28x168xbf16, #tpu.memory_space<vmem>>, %arg4: memref<1x168xf32, #tpu.memory_space<vmem>>, %arg5: memref<14x27xf32, #tpu.memory_space<vmem>>, %arg6: memref<162x84xf32, #tpu.memory_space<vmem>>, %arg7: memref<5x84x160xbf16, #tpu.memory_space<vmem>>, %arg8: memref<1x160xf32, #tpu.memory_space<vmem>>, %arg9: memref<5x9xf32, #tpu.memory_space<vmem>>, %arg10: memref<144x80xf32, #tpu.memory_space<vmem>>, %arg11: memref<5x80x120xbf16, #tpu.memory_space<vmem>>, %arg12: memref<1x120xf32, #tpu.memory_space<vmem>>, %arg13: memref<120x84xbf16, #tpu.memory_space<vmem>>, %arg14: memref<1x84xf32, #tpu.memory_space<vmem>>, %arg15: memref<84x10xbf16, #tpu.memory_space<vmem>>, %arg16: memref<1x10xf32, #tpu.memory_space<vmem>>, %arg17: memref<1x1x10xf32, #tpu.memory_space<vmem>>) attributes {dimension_semantics = [#tpu.dimension_semantics<parallel>], iteration_bounds = array<i64: 2>, scalar_prefetch = 0 : i64, scratch_operands = 0 : i64, tpu.core_type = #tpu.core_type<tc>, window_params = [{transform_indices = @transform_0, window_bounds = array<i64: 1, 28, 28>}, {pipeline_mode = #tpu.pipeline_mode<synchronous>, transform_indices = @transform_1, window_bounds = array<i64: 32, 28>}, {pipeline_mode = #tpu.pipeline_mode<synchronous>, transform_indices = @transform_2, window_bounds = array<i64: 5, 28, 168>}, {pipeline_mode = #tpu.pipeline_mode<synchronous>, transform_indices = @transform_3, window_bounds = array<i64: 1, 168>}, {pipeline_mode = #tpu.pipeline_mode<synchronous>, transform_indices = @transform_4, window_bounds = array<i64: 14, 27>}, {pipeline_mode = #tpu.pipeline_mode<synchronous>, transform_indices = @transform_5, window_bounds = array<i64: 162, 84>}, {pipeline_mode = #tpu.pipeline_mode<synchronous>, transform_indices = @transform_6, window_bounds = array<i64: 5, 84, 160>}, {pipeline_mode = #tpu.pipeline_mode<synchronous>, transform_indices = @transform_7, window_bounds = array<i64: 1, 160>}, {pipeline_mode = #tpu.pipeline_mode<synchronous>, transform_indices = @transform_8, window_bounds = array<i64: 5, 9>}, {pipeline_mode = #tpu.pipeline_mode<synchronous>, transform_indices = @transform_9, window_bounds = array<i64: 144, 80>}, {pipeline_mode = #tpu.pipeline_mode<synchronous>, transform_indices = @transform_10, window_bounds = array<i64: 5, 80, 120>}, {pipeline_mode = #tpu.pipeline_mode<synchronous>, transform_indices = @transform_11, window_bounds = array<i64: 1, 120>}, {pipeline_mode = #tpu.pipeline_mode<synchronous>, transform_indices = @transform_12, window_bounds = array<i64: 120, 84>}, {pipeline_mode = #tpu.pipeline_mode<synchronous>, transform_indices = @transform_13, window_bounds = array<i64: 1, 84>}, {pipeline_mode = #tpu.pipeline_mode<synchronous>, transform_indices = @transform_14, window_bounds = array<i64: 84, 10>}, {pipeline_mode = #tpu.pipeline_mode<synchronous>, transform_indices = @transform_15, window_bounds = array<i64: 1, 10>}, {transform_indices = @transform_16, window_bounds = array<i64: 1, 1, 10>}]} {
    %c0 = arith.constant 0 : index
    %c0_0 = arith.constant 0 : index
    %c0_1 = arith.constant 0 : index
    %0 = vector.load %arg1[%c0, %c0_0, %c0_1] : memref<1x28x28xf32, #tpu.memory_space<vmem>>, vector<1x28x28xf32>
    %1 = vector.shape_cast %0 : vector<1x28x28xf32> to vector<28x28xf32>
    %c0_2 = arith.constant 0 : index
    %c0_3 = arith.constant 0 : index
    %2 = vector.load %arg2[%c0_2, %c0_3] : memref<32x28xf32, #tpu.memory_space<vmem>>, vector<32x28xf32>
    %cst = arith.constant dense<0.000000e+00> : vector<32x28xf32>
    %3 = tpu.matmul %2, %1, %cst {dimension_numbers = #tpu.dot_dimension_numbers<[1], [0], [0], [1], [0, 0, 1, 1], [], []>} : vector<32x28xf32>, vector<28x28xf32>, vector<32x28xf32> -> vector<32x28xf32>
    %4 = vector.extract_strided_slice %3 {offsets = [0, 0], sizes = [28, 28], strides = [1, 1]} : vector<32x28xf32> to vector<28x28xf32>
    %c0_4 = arith.constant 0 : index
    %c0_5 = arith.constant 0 : index
    %c0_6 = arith.constant 0 : index
    %5 = vector.load %arg3[%c0_4, %c0_5, %c0_6] : memref<5x28x168xbf16, #tpu.memory_space<vmem>>, vector<1x28x168xbf16>
    %6 = vector.shape_cast %5 : vector<1x28x168xbf16> to vector<28x168xbf16>
    %7 = arith.truncf %4 : vector<28x28xf32> to vector<28x28xbf16>
    %cst_7 = arith.constant dense<0.000000e+00> : vector<28x168xf32>
    %8 = tpu.matmul %7, %6, %cst_7 {dimension_numbers = #tpu.dot_dimension_numbers<[1], [0], [0], [1], [0, 0, 1, 1], [], []>} : vector<28x28xbf16>, vector<28x168xbf16>, vector<28x168xf32> -> vector<28x168xf32>
    %9 = vector.extract_strided_slice %3 {offsets = [1, 0], sizes = [28, 28], strides = [1, 1]} : vector<32x28xf32> to vector<28x28xf32>
    %c1 = arith.constant 1 : index
    %c0_8 = arith.constant 0 : index
    %c0_9 = arith.constant 0 : index
    %10 = vector.load %arg3[%c1, %c0_8, %c0_9] : memref<5x28x168xbf16, #tpu.memory_space<vmem>>, vector<1x28x168xbf16>
    %11 = vector.shape_cast %10 : vector<1x28x168xbf16> to vector<28x168xbf16>
    %12 = arith.truncf %9 : vector<28x28xf32> to vector<28x28xbf16>
    %cst_10 = arith.constant dense<0.000000e+00> : vector<28x168xf32>
    %13 = tpu.matmul %12, %11, %cst_10 {dimension_numbers = #tpu.dot_dimension_numbers<[1], [0], [0], [1], [0, 0, 1, 1], [], []>} : vector<28x28xbf16>, vector<28x168xbf16>, vector<28x168xf32> -> vector<28x168xf32>
    %14 = arith.addf %8, %13 : vector<28x168xf32>
    %15 = vector.extract_strided_slice %3 {offsets = [2, 0], sizes = [28, 28], strides = [1, 1]} : vector<32x28xf32> to vector<28x28xf32>
    %c2 = arith.constant 2 : index
    %c0_11 = arith.constant 0 : index
    %c0_12 = arith.constant 0 : index
    %16 = vector.load %arg3[%c2, %c0_11, %c0_12] : memref<5x28x168xbf16, #tpu.memory_space<vmem>>, vector<1x28x168xbf16>
    %17 = vector.shape_cast %16 : vector<1x28x168xbf16> to vector<28x168xbf16>
    %18 = arith.truncf %15 : vector<28x28xf32> to vector<28x28xbf16>
    %cst_13 = arith.constant dense<0.000000e+00> : vector<28x168xf32>
    %19 = tpu.matmul %18, %17, %cst_13 {dimension_numbers = #tpu.dot_dimension_numbers<[1], [0], [0], [1], [0, 0, 1, 1], [], []>} : vector<28x28xbf16>, vector<28x168xbf16>, vector<28x168xf32> -> vector<28x168xf32>
    %20 = arith.addf %14, %19 : vector<28x168xf32>
    %21 = vector.extract_strided_slice %3 {offsets = [3, 0], sizes = [28, 28], strides = [1, 1]} : vector<32x28xf32> to vector<28x28xf32>
    %c3 = arith.constant 3 : index
    %c0_14 = arith.constant 0 : index
    %c0_15 = arith.constant 0 : index
    %22 = vector.load %arg3[%c3, %c0_14, %c0_15] : memref<5x28x168xbf16, #tpu.memory_space<vmem>>, vector<1x28x168xbf16>
    %23 = vector.shape_cast %22 : vector<1x28x168xbf16> to vector<28x168xbf16>
    %24 = arith.truncf %21 : vector<28x28xf32> to vector<28x28xbf16>
    %cst_16 = arith.constant dense<0.000000e+00> : vector<28x168xf32>
    %25 = tpu.matmul %24, %23, %cst_16 {dimension_numbers = #tpu.dot_dimension_numbers<[1], [0], [0], [1], [0, 0, 1, 1], [], []>} : vector<28x28xbf16>, vector<28x168xbf16>, vector<28x168xf32> -> vector<28x168xf32>
    %26 = arith.addf %20, %25 : vector<28x168xf32>
    %27 = vector.extract_strided_slice %3 {offsets = [4, 0], sizes = [28, 28], strides = [1, 1]} : vector<32x28xf32> to vector<28x28xf32>
    %c4 = arith.constant 4 : index
    %c0_17 = arith.constant 0 : index
    %c0_18 = arith.constant 0 : index
    %28 = vector.load %arg3[%c4, %c0_17, %c0_18] : memref<5x28x168xbf16, #tpu.memory_space<vmem>>, vector<1x28x168xbf16>
    %29 = vector.shape_cast %28 : vector<1x28x168xbf16> to vector<28x168xbf16>
    %30 = arith.truncf %27 : vector<28x28xf32> to vector<28x28xbf16>
    %cst_19 = arith.constant dense<0.000000e+00> : vector<28x168xf32>
    %31 = tpu.matmul %30, %29, %cst_19 {dimension_numbers = #tpu.dot_dimension_numbers<[1], [0], [0], [1], [0, 0, 1, 1], [], []>} : vector<28x28xbf16>, vector<28x168xbf16>, vector<28x168xf32> -> vector<28x168xf32>
    %32 = arith.addf %26, %31 : vector<28x168xf32>
    %c0_20 = arith.constant 0 : index
    %c0_21 = arith.constant 0 : index
    %33 = vector.load %arg4[%c0_20, %c0_21] : memref<1x168xf32, #tpu.memory_space<vmem>>, vector<1x168xf32>
    %34 = vector.broadcast %33 : vector<1x168xf32> to vector<28x168xf32>
    %35 = arith.addf %32, %34 : vector<28x168xf32>
    %cst_22 = arith.constant 0.000000e+00 : f32
    %36 = vector.broadcast %cst_22 : f32 to vector<28x168xf32>
    %37 = arith.maximumf %35, %36 : vector<28x168xf32>
    %38 = vector.extract_strided_slice %37 {offsets = [0, 0], sizes = [27, 168], strides = [1, 1]} : vector<28x168xf32> to vector<27x168xf32>
    %39 = vector.extract_strided_slice %37 {offsets = [1, 0], sizes = [27, 168], strides = [1, 1]} : vector<28x168xf32> to vector<27x168xf32>
    %40 = arith.maximumf %38, %39 : vector<27x168xf32>
    %c0_23 = arith.constant 0 : index
    %c0_24 = arith.constant 0 : index
    %41 = vector.load %arg5[%c0_23, %c0_24] : memref<14x27xf32, #tpu.memory_space<vmem>>, vector<14x27xf32>
    %cst_25 = arith.constant dense<0.000000e+00> : vector<14x168xf32>
    %42 = tpu.matmul %41, %40, %cst_25 {dimension_numbers = #tpu.dot_dimension_numbers<[1], [0], [0], [1], [0, 0, 1, 1], [], []>} : vector<14x27xf32>, vector<27x168xf32>, vector<14x168xf32> -> vector<14x168xf32>
    %43 = vector.extract_strided_slice %42 {offsets = [0, 0], sizes = [14, 162], strides = [1, 1]} : vector<14x168xf32> to vector<14x162xf32>
    %44 = vector.extract_strided_slice %42 {offsets = [0, 6], sizes = [14, 162], strides = [1, 1]} : vector<14x168xf32> to vector<14x162xf32>
    %45 = arith.maximumf %43, %44 : vector<14x162xf32>
    %c0_26 = arith.constant 0 : index
    %c0_27 = arith.constant 0 : index
    %46 = vector.load %arg6[%c0_26, %c0_27] : memref<162x84xf32, #tpu.memory_space<vmem>>, vector<162x84xf32>
    %cst_28 = arith.constant dense<0.000000e+00> : vector<14x84xf32>
    %47 = tpu.matmul %45, %46, %cst_28 {dimension_numbers = #tpu.dot_dimension_numbers<[1], [0], [0], [1], [0, 0, 1, 1], [], []>} : vector<14x162xf32>, vector<162x84xf32>, vector<14x84xf32> -> vector<14x84xf32>
    %48 = vector.extract_strided_slice %47 {offsets = [0, 0], sizes = [10, 84], strides = [1, 1]} : vector<14x84xf32> to vector<10x84xf32>
    %c0_29 = arith.constant 0 : index
    %c0_30 = arith.constant 0 : index
    %c0_31 = arith.constant 0 : index
    %49 = vector.load %arg7[%c0_29, %c0_30, %c0_31] : memref<5x84x160xbf16, #tpu.memory_space<vmem>>, vector<1x84x160xbf16>
    %50 = vector.shape_cast %49 : vector<1x84x160xbf16> to vector<84x160xbf16>
    %51 = arith.truncf %48 : vector<10x84xf32> to vector<10x84xbf16>
    %cst_32 = arith.constant dense<0.000000e+00> : vector<10x160xf32>
    %52 = tpu.matmul %51, %50, %cst_32 {dimension_numbers = #tpu.dot_dimension_numbers<[1], [0], [0], [1], [0, 0, 1, 1], [], []>} : vector<10x84xbf16>, vector<84x160xbf16>, vector<10x160xf32> -> vector<10x160xf32>
    %53 = vector.extract_strided_slice %47 {offsets = [1, 0], sizes = [10, 84], strides = [1, 1]} : vector<14x84xf32> to vector<10x84xf32>
    %c1_33 = arith.constant 1 : index
    %c0_34 = arith.constant 0 : index
    %c0_35 = arith.constant 0 : index
    %54 = vector.load %arg7[%c1_33, %c0_34, %c0_35] : memref<5x84x160xbf16, #tpu.memory_space<vmem>>, vector<1x84x160xbf16>
    %55 = vector.shape_cast %54 : vector<1x84x160xbf16> to vector<84x160xbf16>
    %56 = arith.truncf %53 : vector<10x84xf32> to vector<10x84xbf16>
    %cst_36 = arith.constant dense<0.000000e+00> : vector<10x160xf32>
    %57 = tpu.matmul %56, %55, %cst_36 {dimension_numbers = #tpu.dot_dimension_numbers<[1], [0], [0], [1], [0, 0, 1, 1], [], []>} : vector<10x84xbf16>, vector<84x160xbf16>, vector<10x160xf32> -> vector<10x160xf32>
    %58 = arith.addf %52, %57 : vector<10x160xf32>
    %59 = vector.extract_strided_slice %47 {offsets = [2, 0], sizes = [10, 84], strides = [1, 1]} : vector<14x84xf32> to vector<10x84xf32>
    %c2_37 = arith.constant 2 : index
    %c0_38 = arith.constant 0 : index
    %c0_39 = arith.constant 0 : index
    %60 = vector.load %arg7[%c2_37, %c0_38, %c0_39] : memref<5x84x160xbf16, #tpu.memory_space<vmem>>, vector<1x84x160xbf16>
    %61 = vector.shape_cast %60 : vector<1x84x160xbf16> to vector<84x160xbf16>
    %62 = arith.truncf %59 : vector<10x84xf32> to vector<10x84xbf16>
    %cst_40 = arith.constant dense<0.000000e+00> : vector<10x160xf32>
    %63 = tpu.matmul %62, %61, %cst_40 {dimension_numbers = #tpu.dot_dimension_numbers<[1], [0], [0], [1], [0, 0, 1, 1], [], []>} : vector<10x84xbf16>, vector<84x160xbf16>, vector<10x160xf32> -> vector<10x160xf32>
    %64 = arith.addf %58, %63 : vector<10x160xf32>
    %65 = vector.extract_strided_slice %47 {offsets = [3, 0], sizes = [10, 84], strides = [1, 1]} : vector<14x84xf32> to vector<10x84xf32>
    %c3_41 = arith.constant 3 : index
    %c0_42 = arith.constant 0 : index
    %c0_43 = arith.constant 0 : index
    %66 = vector.load %arg7[%c3_41, %c0_42, %c0_43] : memref<5x84x160xbf16, #tpu.memory_space<vmem>>, vector<1x84x160xbf16>
    %67 = vector.shape_cast %66 : vector<1x84x160xbf16> to vector<84x160xbf16>
    %68 = arith.truncf %65 : vector<10x84xf32> to vector<10x84xbf16>
    %cst_44 = arith.constant dense<0.000000e+00> : vector<10x160xf32>
    %69 = tpu.matmul %68, %67, %cst_44 {dimension_numbers = #tpu.dot_dimension_numbers<[1], [0], [0], [1], [0, 0, 1, 1], [], []>} : vector<10x84xbf16>, vector<84x160xbf16>, vector<10x160xf32> -> vector<10x160xf32>
    %70 = arith.addf %64, %69 : vector<10x160xf32>
    %71 = vector.extract_strided_slice %47 {offsets = [4, 0], sizes = [10, 84], strides = [1, 1]} : vector<14x84xf32> to vector<10x84xf32>
    %c4_45 = arith.constant 4 : index
    %c0_46 = arith.constant 0 : index
    %c0_47 = arith.constant 0 : index
    %72 = vector.load %arg7[%c4_45, %c0_46, %c0_47] : memref<5x84x160xbf16, #tpu.memory_space<vmem>>, vector<1x84x160xbf16>
    %73 = vector.shape_cast %72 : vector<1x84x160xbf16> to vector<84x160xbf16>
    %74 = arith.truncf %71 : vector<10x84xf32> to vector<10x84xbf16>
    %cst_48 = arith.constant dense<0.000000e+00> : vector<10x160xf32>
    %75 = tpu.matmul %74, %73, %cst_48 {dimension_numbers = #tpu.dot_dimension_numbers<[1], [0], [0], [1], [0, 0, 1, 1], [], []>} : vector<10x84xbf16>, vector<84x160xbf16>, vector<10x160xf32> -> vector<10x160xf32>
    %76 = arith.addf %70, %75 : vector<10x160xf32>
    %c0_49 = arith.constant 0 : index
    %c0_50 = arith.constant 0 : index
    %77 = vector.load %arg8[%c0_49, %c0_50] : memref<1x160xf32, #tpu.memory_space<vmem>>, vector<1x160xf32>
    %78 = vector.broadcast %77 : vector<1x160xf32> to vector<10x160xf32>
    %79 = arith.addf %76, %78 : vector<10x160xf32>
    %cst_51 = arith.constant 0.000000e+00 : f32
    %80 = vector.broadcast %cst_51 : f32 to vector<10x160xf32>
    %81 = arith.maximumf %79, %80 : vector<10x160xf32>
    %82 = vector.extract_strided_slice %81 {offsets = [0, 0], sizes = [9, 160], strides = [1, 1]} : vector<10x160xf32> to vector<9x160xf32>
    %83 = vector.extract_strided_slice %81 {offsets = [1, 0], sizes = [9, 160], strides = [1, 1]} : vector<10x160xf32> to vector<9x160xf32>
    %84 = arith.maximumf %82, %83 : vector<9x160xf32>
    %c0_52 = arith.constant 0 : index
    %c0_53 = arith.constant 0 : index
    %85 = vector.load %arg9[%c0_52, %c0_53] : memref<5x9xf32, #tpu.memory_space<vmem>>, vector<5x9xf32>
    %cst_54 = arith.constant dense<0.000000e+00> : vector<5x160xf32>
    %86 = tpu.matmul %85, %84, %cst_54 {dimension_numbers = #tpu.dot_dimension_numbers<[1], [0], [0], [1], [0, 0, 1, 1], [], []>} : vector<5x9xf32>, vector<9x160xf32>, vector<5x160xf32> -> vector<5x160xf32>
    %87 = vector.extract_strided_slice %86 {offsets = [0, 0], sizes = [5, 144], strides = [1, 1]} : vector<5x160xf32> to vector<5x144xf32>
    %88 = vector.extract_strided_slice %86 {offsets = [0, 16], sizes = [5, 144], strides = [1, 1]} : vector<5x160xf32> to vector<5x144xf32>
    %89 = arith.maximumf %87, %88 : vector<5x144xf32>
    %c0_55 = arith.constant 0 : index
    %c0_56 = arith.constant 0 : index
    %90 = vector.load %arg10[%c0_55, %c0_56] : memref<144x80xf32, #tpu.memory_space<vmem>>, vector<144x80xf32>
    %cst_57 = arith.constant dense<0.000000e+00> : vector<5x80xf32>
    %91 = tpu.matmul %89, %90, %cst_57 {dimension_numbers = #tpu.dot_dimension_numbers<[1], [0], [0], [1], [0, 0, 1, 1], [], []>} : vector<5x144xf32>, vector<144x80xf32>, vector<5x80xf32> -> vector<5x80xf32>
    %92 = vector.extract_strided_slice %91 {offsets = [0, 0], sizes = [1, 80], strides = [1, 1]} : vector<5x80xf32> to vector<1x80xf32>
    %c0_58 = arith.constant 0 : index
    %c0_59 = arith.constant 0 : index
    %c0_60 = arith.constant 0 : index
    %93 = vector.load %arg11[%c0_58, %c0_59, %c0_60] : memref<5x80x120xbf16, #tpu.memory_space<vmem>>, vector<1x80x120xbf16>
    %94 = vector.shape_cast %93 : vector<1x80x120xbf16> to vector<80x120xbf16>
    %95 = arith.truncf %92 : vector<1x80xf32> to vector<1x80xbf16>
    %cst_61 = arith.constant dense<0.000000e+00> : vector<1x120xf32>
    %96 = tpu.matmul %95, %94, %cst_61 {dimension_numbers = #tpu.dot_dimension_numbers<[1], [0], [0], [1], [0, 0, 1, 1], [], []>} : vector<1x80xbf16>, vector<80x120xbf16>, vector<1x120xf32> -> vector<1x120xf32>
    %97 = vector.extract_strided_slice %91 {offsets = [1, 0], sizes = [1, 80], strides = [1, 1]} : vector<5x80xf32> to vector<1x80xf32>
    %c1_62 = arith.constant 1 : index
    %c0_63 = arith.constant 0 : index
    %c0_64 = arith.constant 0 : index
    %98 = vector.load %arg11[%c1_62, %c0_63, %c0_64] : memref<5x80x120xbf16, #tpu.memory_space<vmem>>, vector<1x80x120xbf16>
    %99 = vector.shape_cast %98 : vector<1x80x120xbf16> to vector<80x120xbf16>
    %100 = arith.truncf %97 : vector<1x80xf32> to vector<1x80xbf16>
    %cst_65 = arith.constant dense<0.000000e+00> : vector<1x120xf32>
    %101 = tpu.matmul %100, %99, %cst_65 {dimension_numbers = #tpu.dot_dimension_numbers<[1], [0], [0], [1], [0, 0, 1, 1], [], []>} : vector<1x80xbf16>, vector<80x120xbf16>, vector<1x120xf32> -> vector<1x120xf32>
    %102 = arith.addf %96, %101 : vector<1x120xf32>
    %103 = vector.extract_strided_slice %91 {offsets = [2, 0], sizes = [1, 80], strides = [1, 1]} : vector<5x80xf32> to vector<1x80xf32>
    %c2_66 = arith.constant 2 : index
    %c0_67 = arith.constant 0 : index
    %c0_68 = arith.constant 0 : index
    %104 = vector.load %arg11[%c2_66, %c0_67, %c0_68] : memref<5x80x120xbf16, #tpu.memory_space<vmem>>, vector<1x80x120xbf16>
    %105 = vector.shape_cast %104 : vector<1x80x120xbf16> to vector<80x120xbf16>
    %106 = arith.truncf %103 : vector<1x80xf32> to vector<1x80xbf16>
    %cst_69 = arith.constant dense<0.000000e+00> : vector<1x120xf32>
    %107 = tpu.matmul %106, %105, %cst_69 {dimension_numbers = #tpu.dot_dimension_numbers<[1], [0], [0], [1], [0, 0, 1, 1], [], []>} : vector<1x80xbf16>, vector<80x120xbf16>, vector<1x120xf32> -> vector<1x120xf32>
    %108 = arith.addf %102, %107 : vector<1x120xf32>
    %109 = vector.extract_strided_slice %91 {offsets = [3, 0], sizes = [1, 80], strides = [1, 1]} : vector<5x80xf32> to vector<1x80xf32>
    %c3_70 = arith.constant 3 : index
    %c0_71 = arith.constant 0 : index
    %c0_72 = arith.constant 0 : index
    %110 = vector.load %arg11[%c3_70, %c0_71, %c0_72] : memref<5x80x120xbf16, #tpu.memory_space<vmem>>, vector<1x80x120xbf16>
    %111 = vector.shape_cast %110 : vector<1x80x120xbf16> to vector<80x120xbf16>
    %112 = arith.truncf %109 : vector<1x80xf32> to vector<1x80xbf16>
    %cst_73 = arith.constant dense<0.000000e+00> : vector<1x120xf32>
    %113 = tpu.matmul %112, %111, %cst_73 {dimension_numbers = #tpu.dot_dimension_numbers<[1], [0], [0], [1], [0, 0, 1, 1], [], []>} : vector<1x80xbf16>, vector<80x120xbf16>, vector<1x120xf32> -> vector<1x120xf32>
    %114 = arith.addf %108, %113 : vector<1x120xf32>
    %115 = vector.extract_strided_slice %91 {offsets = [4, 0], sizes = [1, 80], strides = [1, 1]} : vector<5x80xf32> to vector<1x80xf32>
    %c4_74 = arith.constant 4 : index
    %c0_75 = arith.constant 0 : index
    %c0_76 = arith.constant 0 : index
    %116 = vector.load %arg11[%c4_74, %c0_75, %c0_76] : memref<5x80x120xbf16, #tpu.memory_space<vmem>>, vector<1x80x120xbf16>
    %117 = vector.shape_cast %116 : vector<1x80x120xbf16> to vector<80x120xbf16>
    %118 = arith.truncf %115 : vector<1x80xf32> to vector<1x80xbf16>
    %cst_77 = arith.constant dense<0.000000e+00> : vector<1x120xf32>
    %119 = tpu.matmul %118, %117, %cst_77 {dimension_numbers = #tpu.dot_dimension_numbers<[1], [0], [0], [1], [0, 0, 1, 1], [], []>} : vector<1x80xbf16>, vector<80x120xbf16>, vector<1x120xf32> -> vector<1x120xf32>
    %120 = arith.addf %114, %119 : vector<1x120xf32>
    %c0_78 = arith.constant 0 : index
    %c0_79 = arith.constant 0 : index
    %121 = vector.load %arg12[%c0_78, %c0_79] : memref<1x120xf32, #tpu.memory_space<vmem>>, vector<1x120xf32>
    %122 = arith.addf %120, %121 : vector<1x120xf32>
    %cst_80 = arith.constant 0.000000e+00 : f32
    %123 = vector.broadcast %cst_80 : f32 to vector<1x120xf32>
    %124 = arith.maximumf %122, %123 : vector<1x120xf32>
    %c0_81 = arith.constant 0 : index
    %c0_82 = arith.constant 0 : index
    %125 = vector.load %arg13[%c0_81, %c0_82] : memref<120x84xbf16, #tpu.memory_space<vmem>>, vector<120x84xbf16>
    %126 = arith.truncf %124 : vector<1x120xf32> to vector<1x120xbf16>
    %cst_83 = arith.constant dense<0.000000e+00> : vector<1x84xf32>
    %127 = tpu.matmul %126, %125, %cst_83 {dimension_numbers = #tpu.dot_dimension_numbers<[1], [0], [0], [1], [0, 0, 1, 1], [], []>} : vector<1x120xbf16>, vector<120x84xbf16>, vector<1x84xf32> -> vector<1x84xf32>
    %c0_84 = arith.constant 0 : index
    %c0_85 = arith.constant 0 : index
    %128 = vector.load %arg14[%c0_84, %c0_85] : memref<1x84xf32, #tpu.memory_space<vmem>>, vector<1x84xf32>
    %129 = arith.addf %127, %128 : vector<1x84xf32>
    %cst_86 = arith.constant 0.000000e+00 : f32
    %130 = vector.broadcast %cst_86 : f32 to vector<1x84xf32>
    %131 = arith.maximumf %129, %130 : vector<1x84xf32>
    %c0_87 = arith.constant 0 : index
    %c0_88 = arith.constant 0 : index
    %132 = vector.load %arg15[%c0_87, %c0_88] : memref<84x10xbf16, #tpu.memory_space<vmem>>, vector<84x10xbf16>
    %133 = arith.truncf %131 : vector<1x84xf32> to vector<1x84xbf16>
    %cst_89 = arith.constant dense<0.000000e+00> : vector<1x10xf32>
    %134 = tpu.matmul %133, %132, %cst_89 {dimension_numbers = #tpu.dot_dimension_numbers<[1], [0], [0], [1], [0, 0, 1, 1], [], []>} : vector<1x84xbf16>, vector<84x10xbf16>, vector<1x10xf32> -> vector<1x10xf32>
    %c0_90 = arith.constant 0 : index
    %c0_91 = arith.constant 0 : index
    %135 = vector.load %arg16[%c0_90, %c0_91] : memref<1x10xf32, #tpu.memory_space<vmem>>, vector<1x10xf32>
    %136 = arith.addf %134, %135 : vector<1x10xf32>
    %c0_92 = arith.constant 0 : index
    %c0_93 = arith.constant 0 : index
    %c0_94 = arith.constant 0 : index
    %137 = vector.load %arg17[%c0_92, %c0_93, %c0_94] : memref<1x1x10xf32, #tpu.memory_space<vmem>>, vector<1x1x10xf32>
    %138 = vector.shape_cast %137 : vector<1x1x10xf32> to vector<1x10xf32>
    %139 = vector.shape_cast %136 : vector<1x10xf32> to vector<1x1x10xf32>
    tpu.vector_store %arg17[%c0_92, %c0_93, %c0_94], %139 {strides = array<i32>} : memref<1x1x10xf32, #tpu.memory_space<vmem>>, vector<1x1x10xf32>,
    return
  }
  func.func @transform_0(%arg0: i32) -> (i32, i32, i32) {
    %c0_i32 = arith.constant 0 : i32
    %c0_i32_0 = arith.constant 0 : i32
    %c0_i32_1 = arith.constant 0 : i32
    return %arg0, %c0_i32, %c0_i32_0 : i32, i32, i32
  }
  func.func @transform_1(%arg0: i32) -> (i32, i32) {
    %c0_i32 = arith.constant 0 : i32
    %c0_i32_0 = arith.constant 0 : i32
    %c0_i32_1 = arith.constant 0 : i32
    return %c0_i32, %c0_i32_0 : i32, i32
  }
  func.func @transform_2(%arg0: i32) -> (i32, i32, i32) {
    %c0_i32 = arith.constant 0 : i32
    %c0_i32_0 = arith.constant 0 : i32
    %c0_i32_1 = arith.constant 0 : i32
    %c0_i32_2 = arith.constant 0 : i32
    return %c0_i32, %c0_i32_0, %c0_i32_1 : i32, i32, i32
  }
  func.func @transform_3(%arg0: i32) -> (i32, i32) {
    %c0_i32 = arith.constant 0 : i32
    %c0_i32_0 = arith.constant 0 : i32
    %c0_i32_1 = arith.constant 0 : i32
    return %c0_i32, %c0_i32_0 : i32, i32
  }
  func.func @transform_4(%arg0: i32) -> (i32, i32) {
    %c0_i32 = arith.constant 0 : i32
    %c0_i32_0 = arith.constant 0 : i32
    %c0_i32_1 = arith.constant 0 : i32
    return %c0_i32, %c0_i32_0 : i32, i32
  }
  func.func @transform_5(%arg0: i32) -> (i32, i32) {
    %c0_i32 = arith.constant 0 : i32
    %c0_i32_0 = arith.constant 0 : i32
    %c0_i32_1 = arith.constant 0 : i32
    return %c0_i32, %c0_i32_0 : i32, i32
  }
  func.func @transform_6(%arg0: i32) -> (i32, i32, i32) {
    %c0_i32 = arith.constant 0 : i32
    %c0_i32_0 = arith.constant 0 : i32
    %c0_i32_1 = arith.constant 0 : i32
    %c0_i32_2 = arith.constant 0 : i32
    return %c0_i32, %c0_i32_0, %c0_i32_1 : i32, i32, i32
  }
  func.func @transform_7(%arg0: i32) -> (i32, i32) {
    %c0_i32 = arith.constant 0 : i32
    %c0_i32_0 = arith.constant 0 : i32
    %c0_i32_1 = arith.constant 0 : i32
    return %c0_i32, %c0_i32_0 : i32, i32
  }
  func.func @transform_8(%arg0: i32) -> (i32, i32) {
    %c0_i32 = arith.constant 0 : i32
    %c0_i32_0 = arith.constant 0 : i32
    %c0_i32_1 = arith.constant 0 : i32
    return %c0_i32, %c0_i32_0 : i32, i32
  }
  func.func @transform_9(%arg0: i32) -> (i32, i32) {
    %c0_i32 = arith.constant 0 : i32
    %c0_i32_0 = arith.constant 0 : i32
    %c0_i32_1 = arith.constant 0 : i32
    return %c0_i32, %c0_i32_0 : i32, i32
  }
  func.func @transform_10(%arg0: i32) -> (i32, i32, i32) {
    %c0_i32 = arith.constant 0 : i32
    %c0_i32_0 = arith.constant 0 : i32
    %c0_i32_1 = arith.constant 0 : i32
    %c0_i32_2 = arith.constant 0 : i32
    return %c0_i32, %c0_i32_0, %c0_i32_1 : i32, i32, i32
  }
  func.func @transform_11(%arg0: i32) -> (i32, i32) {
    %c0_i32 = arith.constant 0 : i32
    %c0_i32_0 = arith.constant 0 : i32
    %c0_i32_1 = arith.constant 0 : i32
    return %c0_i32, %c0_i32_0 : i32, i32
  }
  func.func @transform_12(%arg0: i32) -> (i32, i32) {
    %c0_i32 = arith.constant 0 : i32
    %c0_i32_0 = arith.constant 0 : i32
    %c0_i32_1 = arith.constant 0 : i32
    return %c0_i32, %c0_i32_0 : i32, i32
  }
  func.func @transform_13(%arg0: i32) -> (i32, i32) {
    %c0_i32 = arith.constant 0 : i32
    %c0_i32_0 = arith.constant 0 : i32
    %c0_i32_1 = arith.constant 0 : i32
    return %c0_i32, %c0_i32_0 : i32, i32
  }
  func.func @transform_14(%arg0: i32) -> (i32, i32) {
    %c0_i32 = arith.constant 0 : i32
    %c0_i32_0 = arith.constant 0 : i32
    %c0_i32_1 = arith.constant 0 : i32
    return %c0_i32, %c0_i32_0 : i32, i32
  }
  func.func @transform_15(%arg0: i32) -> (i32, i32) {
    %c0_i32 = arith.constant 0 : i32
    %c0_i32_0 = arith.constant 0 : i32
    %c0_i32_1 = arith.constant 0 : i32
    return %c0_i32, %c0_i32_0 : i32, i32
  }
  func.func @transform_16(%arg0: i32) -> (i32, i32, i32) {
    %c0_i32 = arith.constant 0 : i32
    %c0_i32_0 = arith.constant 0 : i32
    %c0_i32_1 = arith.constant 0 : i32
    return %arg0, %c0_i32, %c0_i32_0 : i32, i32, i32
  }
}

</mosaic_0001>

<bundles_post_ra>
// kernel: lenet_forward.1
= control target key start
LH: loop header
LB: loop body
LE: loop exit
PB: predicated region body
PF: predicated region fallthrough
CT: control target
= control target key end

     0   :  { %s4233_s0 = inlined_call_operand.vmem [shape: f32[2,28,28], index: 0, kind: input, shape index: {}]   ;;  %s4234_s1 = inlined_call_operand.vmem [shape: f32[32,28], index: 1, kind: input, shape index: {}]   ;;  %s4235_s2 = inlined_call_operand.vmem [shape: bf16[5,28,168], index: 2, kind: input, shape index: {}]   ;;  %s4236_s3 = inlined_call_operand.vmem [shape: f32[1,168], index: 3, kind: input, shape index: {}]   ;;  %s4237_s4 = inlined_call_operand.vmem [shape: f32[14,27], index: 4, kind: input, shape index: {}]   ;;  %s4238_s5 = inlined_call_operand.vmem [shape: f32[162,84], index: 5, kind: input, shape index: {}]   ;;  %s4239_s6 = inlined_call_operand.vmem [shape: bf16[5,84,160], index: 6, kind: input, shape index: {}]   ;;  %s4240_s7 = inlined_call_operand.vmem [shape: f32[1,160], index: 7, kind: input, shape index: {}]   ;;  %s4241_s8 = inlined_call_operand.vmem [shape: f32[5,9], index: 8, kind: input, shape index: {}]   ;;  %s4242_s9 = inlined_call_operand.vmem [shape: f32[144,80], index: 9, kind: input, shape index: {}]   ;;  %s4243_s10 = inlined_call_operand.vmem [shape: bf16[5,80,120], index: 10, kind: input, shape index: {}]   ;;  %s4244_s11 = inlined_call_operand.vmem [shape: f32[1,120], index: 11, kind: input, shape index: {}]   ;;  %s4245_s12 = inlined_call_operand.vmem [shape: bf16[120,84], index: 12, kind: input, shape index: {}]   ;;  %s4246_s13 = inlined_call_operand.vmem [shape: f32[1,84], index: 13, kind: input, shape index: {}]   ;;  %s4247_s14 = inlined_call_operand.vmem [shape: bf16[84,10], index: 14, kind: input, shape index: {}]   ;;  %s4248_s15 = inlined_call_operand.vmem [shape: f32[1,10], index: 15, kind: input, shape index: {}]   ;;  %s4249_s16 = inlined_call_operand.hbm [shape: f32[2,1,10], index: 16, kind: output, shape index: {}]  }
   0x1   :  { %4254 = sst [smem:[#allocation9_spill]] %s4233_s0 }
   0x2   :  { %4255 = sst [smem:[#allocation10_spill]] %s4234_s1 }
   0x3   :  { %4256 = sst [smem:[#allocation11_spill]] %s4235_s2 }
   0x4   :  { %21 = vsyncpa [#allocation3], 0 }
   0x5   :  { %23 = vsyncpa [#allocation3 + $0x1], 0  ;;  %s3336_s21 = smov 0   ;;  %s3338_s22 = smov 0  }
   0x6   :  { %s3340_s23 = smov 0   ;;  %s3342_s24 = smov 0  }
   0x7 LB: > { %4257 = sst [smem:[#allocation5_spill]] %s3243_s23  ;;  %s3357_s25 = sadd.s32 4294967295, %s3247_s24   ;;  %s3247_s24 = sphi %s3342_s24, %s4267_s24   ;;  %s3243_s23 = sphi %s3340_s23, %s4269_s23   ;;  %s3239_s22 = sphi %s3338_s22, %s4271_s22   ;;  %s3235_s21 = sphi %s3336_s21, %s4270_s21  }
   0x8   : > { %s2440_s26 = sadd.s32 4294967294, %s3247_s24   ;;  %s3361_s27 = sadd.s32 1, %s3247_s24  }
   0x9   : > { %4258 = sst [smem:[#allocation6_spill]] %s3361_s27  ;;  %s377_s28 = sadd.s32 1, %s3243_s23 }
   0xa   : > { %s374_s29 = ssub.s32 %s3247_s24, %s3361_s27  ;;  %p387_p0 = scmp.ne.s32.totalorder %s3243_s23, %s3239_s22 }
   0xb   : > { %p375_p1 = scmp.eq.s32.totalorder %s374_s29, 0  ;;  %p388_p2 = scmp.eq.s32.totalorder %s3357_s25, 1 }
   0xc   : > { %p393_p3 = scmp.ne.s32.totalorder %s3239_s22, %s3235_s21  ;;  %p394_p4 = scmp.eq.s32.totalorder %s2440_s26, 1 }
   0xd   : > { %s3372_s30 = scalar_select %p375_p1, %s3243_s23, %s377_s28  }
   0xe   : > { %p3374_p5 = por %p388_p2, %p387_p0  ;;  %p3378_p6 = por %p394_p4, %p393_p3 }
   0xf   : > { %4259 = sst [smem:[#allocation7_spill]] %s3372_s30  ;;  %p2443_p7 = scmp.ge.s32.totalorder %s3247_s24, 1 }
  0x10   : > { %s4261_s17 = scalar_select %p3378_p6, 1, 0 }
  0x11   : > { %p465_p8 = scmp.lt.s32.totalorder %s3247_s24, 3 }
  0x12   : > { %4262 = sst [smem:[#allocation8_spill]] %s4261_s17 }
  0x13   : > { %p466_p9 = pnand %p2443_p7, %p465_p8 }
  0x14   : > { %p514_p10 = scmp.lt.s32.totalorder (!%p466_p9), %s3357_s25, 1  ;;  %s4263_s28 = sld [smem:[#allocation9_spill]] (!%p466_p9) }
  0x15   : > { %469 = sbr.rel (%p466_p9) target bundleno = 1803 (0x70b), region = 84  ;;  %s4264_s1 = sld [smem:[#allocation10_spill]] (!%p466_p9) }
  0x16   : > { %s4265_s2 = sld [smem:[#allocation11_spill]] (!%p466_p9)  ;;  %s3249_s20 = smov (!%p466_p9), 122  }
  0x17   : > { %s3250_s30 = smov (!%p466_p9), 112   ;;  %s3205_s27 = scalar_lea.hbm (!%p466_p9), %s4249_s16, 2 }
  0x1a   : > { %s515_s18 = scalar_select %p514_p10, %s3357_s25, 1  ;;  %vm541_vm0 = vcmask 1043456   ;;  %vm528_vm1 = vcmask 228352   ;;  %vm625_vm2 = vcmask 1045504   ;;  %vm585_vm3 = vsmask.f32 7424 }
  0x1b   : > { %v524_v4 = vld [vmem:[%s4264_s1] sm:$0xff]  ;;  %v527_v5 = vld [vmem:[%s4264_s1 + $0x18] sm:$0xff]  ;;  %v525_v6 = vld [vmem:[%s4264_s1 + $0x8] sm:$0xff]  ;;  %vm828_vm4 = vsmask.f32 6400  ;;  %vm743_vm5 = vcmask 1046528  }
  0x1c   : > { %s3032_s19 = sshll.u32 %s515_s18, 5  ;;  %v526_v7 = vld [vmem:[%s4264_s1 + $0x10] sm:$0xff]  ;;  %v3036_v9 = vld [vmem:[%s4265_s2 + $0x14] sm:$0x30]  ;;  %v2487_v12 = vld [vmem:[%s4265_s2 + $0x18] sm:$0x30] }
  0x1d   : > { %s518_s29 = scalar_lea.vmem %s4263_s28, %s3032_s19  ;;  %v2485_v8 = vld [vmem:[%s4265_s2 + $0x10] sm:$0xf]  ;;  %v3035_v11 = vld [vmem:[%s4265_s2 + $0x14] sm:$0xf]  ;;  %v2477_v16 = vld [vmem:[%s4265_s2] sm:$0xf] }
  0x1e   : > { %v523_v0 = vld [vmem:[%s518_s29 + $0x18] sm:$0xf]  ;;  %v522_v1 = vld [vmem:[%s518_s29 + $0x10] sm:$0xff]  ;;  %v521_v2 = vld [vmem:[%s518_s29 + $0x8] sm:$0xff]  ;;  %v2486_v10 = vor.u32 %v3036_v9, %v2485_v8  ;;  %v2490_v13 = vor.u32 %v3035_v11, %v2487_v12  ;;  %vm1067_vm6 = vcmask 1042432   ;;  %vm1060_vm7 = vcmask 220160  }
  0x1f   : > { %2446 = vmatpush.msk.msra.mxu0 %vm541_vm0, %v523_v0  ;;  %3140 = vmatpush.msk.msra.mxu3 %vm541_vm0, %v523_v0  ;;  %v520_v3 = vld [vmem:[%s518_s29] sm:$0xff]  ;;  %v3034_v17 = vld [vmem:[%s4265_s2 + $0x4] sm:$0xf0]  ;;  %v2479_v20 = vld [vmem:[%s4265_s2 + $0x8] sm:$0xf0]  ;;  %vm1171_vm8 = vcmask 1041408  }
  0x20   : > { %v693_v14 = vsel %vm625_vm2, %v2486_v10, 0  ;;  %v696_v15 = vsel %vm625_vm2, %v2490_v13, 0  ;;  %v3033_v18 = vld [vmem:[%s4265_s2 + $0x4] sm:$0xf]  ;;  %v2478_v19 = vor.u32 %v3034_v17, %v2477_v16  ;;  %v2465_v22 = vld [vmem:[%s4265_s2 + $0x30] sm:$0xf] }
  0x21   : > { %558 = vmatpush.msra.mxu0 %v522_v1  ;;  %3141 = vmatpush.msra.mxu3 %v522_v1  ;;  %v2482_v21 = vor.u32 %v3033_v18, %v2479_v20  ;;  %v3040_v23 = vld [vmem:[%s4265_s2 + $0x34] sm:$0x30]  ;;  %v3039_v24 = vld [vmem:[%s4265_s2 + $0x34] sm:$0xf]  ;;  %v2467_v26 = vld [vmem:[%s4265_s2 + $0x38] sm:$0x30] }
  0x22   : > { %v2466_v25 = vor.u32 %v3040_v23, %v2465_v22  ;;  %v2470_v27 = vor.u32 %v3039_v24, %v2467_v26  ;;  %v2457_v30 = vld [vmem:[%s4265_s2 + $0x20] sm:$0xf]  ;;  %v3038_v31 = vld [vmem:[%s4265_s2 + $0x24] sm:$0xf0]  ;;  %v3037_v33 = vld [vmem:[%s4265_s2 + $0x24] sm:$0xf] }
  0x23   : > { %559 = vmatpush.msra.mxu0 %v521_v2  ;;  %3142 = vmatpush.msra.mxu3 %v521_v2  ;;  %v2458_v32 = vor.u32 %v3038_v31, %v2457_v30  ;;  %v2459_v34 = vld [vmem:[%s4265_s2 + $0x28] sm:$0xf0]  ;;  %v2533_v36 = vld [vmem:[%s4265_s2 + $0x70] sm:$0xf]  ;;  %v3048_v37 = vld [vmem:[%s4265_s2 + $0x74] sm:$0x30] }
  0x24   : > { %v627_v28 = vsel %vm625_vm2, %v2466_v25, 0  ;;  %v630_v29 = vsel %vm625_vm2, %v2470_v27, 0  ;;  %v2462_v35 = vor.u32 %v3037_v33, %v2459_v34  ;;  %v3047_v38 = vld [vmem:[%s4265_s2 + $0x74] sm:$0xf]  ;;  %v2534_v39 = vor.u32 %v3048_v37, %v2533_v36  ;;  %v2535_v40 = vld [vmem:[%s4265_s2 + $0x78] sm:$0x30] }
  0x25   : > { %560 = vmatpush.msra.mxu0 %v520_v3  ;;  %3143 = vmatpush.msra.mxu3 %v520_v3  ;;  %v2538_v41 = vor.u32 %v3047_v38, %v2535_v40  ;;  %v2525_v45 = vld [vmem:[%s4265_s2 + $0x60] sm:$0xf]  ;;  %v3046_v46 = vld [vmem:[%s4265_s2 + $0x64] sm:$0xf0]  ;;  %v3045_v47 = vld [vmem:[%s4265_s2 + $0x64] sm:$0xf] }
  0x26   : > { %2447 = vmatmul.msk.f32.vlgmr.msra.gmra.mxu0 %vm528_vm1, %v524_v4  ;;  %2450 = vmatmul.msk.f32.vlgmr.msra.gmra.mxu3 %vm528_vm1, %v527_v5  ;;  %v861_v42 = vsel %vm625_vm2, %v2534_v39, 0  ;;  %v2526_v48 = vor.u32 %v3046_v46, %v2525_v45  ;;  %v2527_v49 = vld [vmem:[%s4265_s2 + $0x68] sm:$0xf0]  ;;  %v2509_v53 = vld [vmem:[%s4265_s2 + $0x50] sm:$0xf]  ;;  %vm1132_vm9 = vcmask 998400  }
  0x27   : > { %704 = vmatpush.bf16.msrb.mxu3 %v693_v14  ;;  %723 = vmatpush.bf16.msrb.mxu0 %v696_v15  ;;  %v864_v43 = vsel %vm625_vm2, %v2538_v41, 0  ;;  %v2530_v50 = vor.u32 %v3045_v47, %v2527_v49  ;;  %v3044_v54 = vld [vmem:[%s4265_s2 + $0x54] sm:$0x30]  ;;  %v3043_v56 = vld [vmem:[%s4265_s2 + $0x54] sm:$0xf]  ;;  %vm1164_vm10 = vcmask 277504  }
  0x28   : > { %638 = vmatpush.bf16.msra.mxu1 %v627_v28  ;;  %657 = vmatpush.bf16.msra.mxu2 %v630_v29  ;;  %v2510_v55 = vor.u32 %v3044_v54, %v2509_v53  ;;  %v2511_v57 = vld [vmem:[%s4265_s2 + $0x58] sm:$0x30]  ;;  %v2501_v58 = vld [vmem:[%s4265_s2 + $0x40] sm:$0xf]  ;;  %v3042_v61 = vld [vmem:[%s4265_s2 + $0x44] sm:$0xf0] }
  0x29   : > { %v2514_v60 = vor.u32 %v3043_v56, %v2511_v57  ;;  %v3041_v0 = vld [vmem:[%s4265_s2 + $0x44] sm:$0xf]  ;;  %v2503_v1 = vld [vmem:[%s4265_s2 + $0x48] sm:$0xf0]  ;;  %v2502_v3 = vor.u32 %v3042_v61, %v2501_v58  ;;  %v2557_v24 = vld [vmem:[%s4265_s2 + $0x90] sm:$0xf] }
  0x2a   : > { %v772_v63 = vsel %vm625_vm2, %v2510_v55, 0  ;;  %v2506_v5 = vor.u32 %v3041_v0, %v2503_v1  ;;  %v3052_v25 = vld [vmem:[%s4265_s2 + $0x94] sm:$0x30]  ;;  %v3051_v26 = vld [vmem:[%s4265_s2 + $0x94] sm:$0xf]  ;;  %vm1307_vm11 = vcmask 687104  }
  0x2b   : > { %705 = vmatpush.bf16.msrb.mxu3 %v2478_v19  ;;  %724 = vmatpush.bf16.msrb.mxu0 %v2482_v21  ;;  %v775_v2 = vsel %vm625_vm2, %v2514_v60, 0  ;;  %v2558_v27 = vor.u32 %v3052_v25, %v2557_v24  ;;  %v2559_v28 = vld [vmem:[%s4265_s2 + $0x98] sm:$0x30]  ;;  %v2549_v29 = vld [vmem:[%s4265_s2 + $0x80] sm:$0xf]  ;;  %vm1803_vm12 = vcmask 1040384  }
  0x2c   : > { %639 = vmatpush.bf16.msra.mxu1 %v2458_v32  ;;  %658 = vmatpush.bf16.msra.mxu2 %v2462_v35  ;;  %v3050_v30 = vld [vmem:[%s4265_s2 + $0x84] sm:$0xf0]  ;;  %v2562_v32 = vor.u32 %v3051_v26, %v2559_v28  ;;  %v3049_v33 = vld [vmem:[%s4265_s2 + $0x84] sm:$0xf]  ;;  %v2551_v34 = vld [vmem:[%s4265_s2 + $0x88] sm:$0xf0]  ;;  %s2381_s2 = scalar_lea.hbm %s4249_s16, %s3357_s25 }
  0x2d   : > { %v946_v35 = vsel %vm625_vm2, %v2558_v27, 0  ;;  %v2550_v37 = vor.u32 %v3050_v30, %v2549_v29  ;;  %v2554_v38 = vor.u32 %v3049_v33, %v2551_v34  ;;  %vm1799_vm13 = vcmask 72704   ;;  %s512_s29 = sand.u32 1, %s3239_s22   ;;  %s2385_s1 = sshll.u32 %s2381_s2, 4  ;;  %s2386_s1 = int_to_ptr.hbm [resolvable:$true] %s2385_s1 }
  0x2e   : > { %2448 = vmatmul.msk.f32.gmra.mxu0 %vm528_vm1, %v525_v6  ;;  %v949_v36 = vsel %vm625_vm2, %v2562_v32, 0  ;;  %vm1856_vm14 = vcmask 916480   ;;  %vm1880_vm15 = vcmask 130048   ;;  %s513_s26 = scalar_lea.vmem [#allocation2], %s512_s29  ;;  %s3199_s28 = sshra.s32 %s2386_s1, 4  ;;  %s3200_s28 = int_to_ptr.hbm [resolvable:$true] %s3199_s28 }
  0x2f   : > { %872 = vmatpush.bf16.msra.mxu3 %v861_v42  ;;  %891 = vmatpush.bf16.msra.mxu0 %v864_v43  ;;  %s2383_s23 = sshll.u32 %s513_s26, 4  ;;  %p3206_p0 = scmp.lt.s32.totalorder %s3200_s28, %s4249_s16  ;;  %s2384_s23 = int_to_ptr.vmem [resolvable:$true] %s2383_s23 }
  0x30   : > { %783 = vmatpush.bf16.msrb.mxu1 %v772_v63  ;;  %802 = vmatpush.bf16.msrb.mxu2 %v775_v2 }
  0x33   : > { %873 = vmatpush.bf16.msra.mxu3 %v2526_v48  ;;  %892 = vmatpush.bf16.msra.mxu0 %v2530_v50 }
  0x34   : > { %784 = vmatpush.bf16.msrb.mxu1 %v2502_v3  ;;  %803 = vmatpush.bf16.msrb.mxu2 %v2506_v5 }
  0x36   : > { %2449 = vmatmul.msk.f32.gmra.mxu0 %vm528_vm1, %v526_v7 }
  0xa3   : > { %v562_v44 = vpop.f32.mrf.mxu0 }
  0xa9   : > { %v571_v62 = vpop.f32.mrf.mxu3 }
  0xab   : > { %v565_v51 = vpop.f32.mrf.mxu0 }
  0xac   : > { %v3485_v52 = vpack.c.bf16 %v565_v51, %v562_v44 }
  0xae   : > { %2491 = vmatmul.msk.bf16.vlgmr.msrb.gmra.mxu3 %vm528_vm1, %v3485_v52  ;;  %2493 = vmatmul.msk.bf16.vlgmr.msrb.gmra.mxu0 %vm528_vm1, %v3485_v52  ;;  %v589_v59 = vshll.u32 %v3485_v52, 16  ;;  %v587_v8 = vshrl.u32 %v3485_v52, 16  ;;  %v918_v11 = vrot.slane %v3485_v52, 2  ;;  %v744_v40 = vrot.slane %v3485_v52, 1 }
  0xb0   : > { %v591_v7 = vrot.slane %v589_v59, 1  ;;  %v829_v19 = vrot.slane %v587_v8, 1  ;;  %v830_v20 = vrot.slane %v589_v59, 2 }
  0xb2   : > { %v592_v12 = vor.u32 %v591_v7, %v587_v8  ;;  %v831_v23 = vor.u32 %v830_v20, %v829_v19  ;;  %v997_v7 = vld [vmem:[%s4236_s3] sm:$0x3] }
  0xb3   : > { %v568_v4 = vpop.f32.mrf.mxu0  ;;  %v1000_v26 = vperm.slane %v997_v7, 1 }
  0xb4   : > { %v579_v6 = vpack.c.bf16 %v571_v62, %v568_v4 }
  0xb6   : > { %v594_v9 = vshll.u32 %v579_v6, 16  ;;  %v919_v10 = vrot.slane %v579_v6, 2  ;;  %v598_v16 = vshrl.u32 %v579_v6, 16  ;;  %v745_v39 = vrot.slane %v579_v6, 1 }
  0xb8   : > { %v596_v13 = vrot.slane %v594_v9, 1  ;;  %v920_v14 = vsel %vm625_vm2, %v918_v11, %v919_v10  ;;  %v833_v17 = vrot.slane %v594_v9, 2  ;;  %v832_v18 = vrot.slane %v598_v16, 1 }
  0xb9   : > { %v746_v41 = vsel %vm743_vm5, %v744_v40, %v745_v39  ;;  %vm2370_vm2 = vcmask 73728  }
  0xba   : > { %v597_v15 = vsel %vm585_vm3, %v592_v12, %v596_v13  ;;  %v600_v21 = vor.u32 %v598_v16, %v596_v13  ;;  %v834_v22 = vor.u32 %v833_v17, %v832_v18 }
  0xbb   : > { %2471 = vmatmul.msk.bf16.vlgmr.msra.gmra.mxu1 %vm528_vm1, %v597_v15  ;;  %2473 = vmatmul.msk.bf16.vlgmr.msra.gmra.mxu2 %vm528_vm1, %v597_v15  ;;  %v999_v15 = vperm.slane %v997_v7, 0 }
  0xbc   : > { %v835_v31 = vsel %vm828_vm4, %v831_v23, %v834_v22  ;;  %957 = vmatpush.bf16.msra.mxu1 %v946_v35  ;;  %976 = vmatpush.bf16.msra.mxu2 %v949_v36 }
  0xbe   : > { %2492 = vmatmul.msk.bf16.gmra.mxu3 %vm528_vm1, %v579_v6  ;;  %2494 = vmatmul.msk.bf16.gmra.mxu0 %vm528_vm1, %v579_v6 }
  0xc0   : > { %958 = vmatpush.bf16.msra.mxu1 %v2550_v37  ;;  %977 = vmatpush.bf16.msra.mxu2 %v2554_v38 }
  0xcb   : > { %2472 = vmatmul.msk.bf16.gmra.mxu1 %vm528_vm1, %v600_v21  ;;  %2474 = vmatmul.msk.bf16.gmra.mxu2 %vm528_vm1, %v600_v21 }
  0xce   : > { %2539 = vmatmul.msk.bf16.vlgmr.msra.gmra.mxu3 %vm528_vm1, %v835_v31  ;;  %2541 = vmatmul.msk.bf16.vlgmr.msra.gmra.mxu0 %vm528_vm1, %v835_v31 }
  0xdb   : > { %2515 = vmatmul.msk.bf16.vlgmr.msrb.gmra.mxu1 %vm528_vm1, %v746_v41  ;;  %2517 = vmatmul.msk.bf16.vlgmr.msrb.gmra.mxu2 %vm528_vm1, %v746_v41 }
  0xde   : > { %2540 = vmatmul.msk.bf16.gmra.mxu3 %vm528_vm1, %v834_v22  ;;  %2542 = vmatmul.msk.bf16.gmra.mxu0 %vm528_vm1, %v834_v22 }
  0xeb   : > { %2516 = vmatmul.msk.bf16.gmra.mxu1 %vm528_vm1, %v745_v39  ;;  %2518 = vmatmul.msk.bf16.gmra.mxu2 %vm528_vm1, %v745_v39 }
  0xfb   : > { %2563 = vmatmul.msk.bf16.vlgmr.msra.gmra.mxu1 %vm528_vm1, %v920_v14  ;;  %2565 = vmatmul.msk.bf16.vlgmr.msra.gmra.mxu2 %vm528_vm1, %v920_v14 }
 0x10b   : > { %2564 = vmatmul.msk.bf16.gmra.mxu1 %vm528_vm1, %v919_v10  ;;  %2566 = vmatmul.msk.bf16.gmra.mxu2 %vm528_vm1, %v919_v10  ;;  %vm1979_vm1 = vcmask 654336  }
 0x12b   : > { %v726_v48 = vpop.f32.mrf.mxu0 }
 0x131   : > { %v707_v46 = vpop.f32.mrf.mxu3 }
 0x133   : > { %v728_v53 = vpop.f32.mrf.mxu0 }
 0x138   : > { %v641_v42 = vpop.f32.mrf.mxu1 }
 0x139   : > { %v709_v51 = vpop.f32.mrf.mxu3  ;;  %v708_v2 = vadd.f32 %v707_v46, %v641_v42 }
 0x13b   : > { %v731_v58 = vpop.f32.mrf.mxu0 }
 0x13e   : > { %v660_v43 = vpop.f32.mrf.mxu2 }
 0x13f   : > { %v727_v8 = vadd.f32 %v726_v48, %v660_v43 }
 0x140   : > { %v643_v44 = vpop.f32.mrf.mxu1 }
 0x141   : > { %v712_v55 = vpop.f32.mrf.mxu3  ;;  %v710_v9 = vadd.f32 %v709_v51, %v643_v44 }
 0x143   : > { %v733_v62 = vpop.f32.mrf.mxu0 }
 0x146   : > { %v662_v45 = vpop.f32.mrf.mxu2 }
 0x147   : > { %v729_v17 = vadd.f32 %v728_v53, %v662_v45 }
 0x148   : > { %v646_v47 = vpop.f32.mrf.mxu1 }
 0x149   : > { %v714_v59 = vpop.f32.mrf.mxu3  ;;  %v713_v21 = vadd.f32 %v712_v55, %v646_v47 }
 0x14b   : > { %v894_v4 = vpop.f32.mrf.mxu0 }
 0x14e   : > { %v665_v49 = vpop.f32.mrf.mxu2 }
 0x14f   : > { %v732_v35 = vadd.f32 %v731_v58, %v665_v49 }
 0x150   : > { %v648_v50 = vpop.f32.mrf.mxu1 }
 0x151   : > { %v875_v0 = vpop.f32.mrf.mxu3  ;;  %v715_v41 = vadd.f32 %v714_v59, %v648_v50 }
 0x153   : > { %v896_v22 = vpop.f32.mrf.mxu0 }
 0x156   : > { %v3567_v52 = vpop.f32.mrf.mxu2 }
 0x158   : > { %v786_v54 = vpop.f32.mrf.mxu1 }
 0x159   : > { %v815_v3 = vadd.f32 %v786_v54, %v708_v2  ;;  %v877_v11 = vpop.f32.mrf.mxu3 }
 0x15b   : > { %v904_v10 = vadd.f32 %v875_v0, %v815_v3  ;;  %v899_v48 = vpop.f32.mrf.mxu0 }
 0x15e   : > { %v805_v56 = vpop.f32.mrf.mxu2 }
 0x15f   : > { %v816_v12 = vadd.f32 %v805_v56, %v727_v8 }
 0x160   : > { %v788_v57 = vpop.f32.mrf.mxu1 }
 0x161   : > { %v817_v13 = vadd.f32 %v788_v57, %v710_v9  ;;  %v905_v19 = vadd.f32 %v894_v4, %v816_v12  ;;  %v880_v31 = vpop.f32.mrf.mxu3 }
 0x163   : > { %v906_v20 = vadd.f32 %v877_v11, %v817_v13  ;;  %v901_v12 = vpop.f32.mrf.mxu0 }
 0x166   : > { %v807_v60 = vpop.f32.mrf.mxu2 }
 0x167   : > { %v818_v24 = vadd.f32 %v807_v60, %v729_v17  ;;  %v734_v60 = vadd.f32 %v733_v62, %v3567_v52 }
 0x168   : > { %v791_v61 = vpop.f32.mrf.mxu1 }
 0x169   : > { %v819_v28 = vadd.f32 %v791_v61, %v713_v21  ;;  %v907_v34 = vadd.f32 %v896_v22, %v818_v24  ;;  %v882_v61 = vpop.f32.mrf.mxu3 }
 0x16b   : > { %v908_v40 = vadd.f32 %v880_v31, %v819_v28  ;;  %v1059_v28 = vld [vmem:[%s4237_s4 + $0x8] sm:$0x3f] }
 0x16c   : > { %v1156_v31 = vld [vmem:[%s4238_s5 + $0x68] sm:$0xff] }
 0x16e   : > { %v810_v63 = vpop.f32.mrf.mxu2 }
 0x16f   : > { %v820_v42 = vadd.f32 %v810_v63, %v732_v35  ;;  %v1153_v35 = vld [vmem:[%s4238_s5 + $0x50] sm:$0xff] }
 0x170   : > { %v793_v1 = vpop.f32.mrf.mxu1 }
 0x171   : > { %v821_v53 = vadd.f32 %v793_v1, %v715_v41  ;;  %v909_v58 = vadd.f32 %v899_v48, %v820_v42  ;;  %v1161_v48 = vld [vmem:[%s4238_s5 + $0x90] sm:$0xff] }
 0x173   : > { %v910_v0 = vadd.f32 %v882_v61, %v821_v53  ;;  %v1160_v53 = vld [vmem:[%s4238_s5 + $0x88] sm:$0xff] }
 0x176   : > { %v812_v5 = vpop.f32.mrf.mxu2 }
 0x178   : > { %v960_v6 = vpop.f32.mrf.mxu1 }
 0x179   : > { %v989_v14 = vadd.f32 %v960_v6, %v904_v10  ;;  %v822_v6 = vadd.f32 %v812_v5, %v734_v60 }
 0x17b   : > { %v1003_v18 = vadd.f32 %v999_v15, %v989_v14  ;;  %v911_v62 = vadd.f32 %v901_v12, %v822_v6  ;;  %v3061_v6 = vld [vmem:[%s4239_s6 + $0x44] sm:$0xf] }
 0x17d   : > { %v1011_v29 = vmax.f32 %v1003_v18, 0.0 }
 0x17e   : > { %v979_v16 = vpop.f32.mrf.mxu2 }
 0x17f   : > { %v990_v25 = vadd.f32 %v979_v16, %v905_v19  ;;  %v1028_v37 = vrot.slane %v1011_v29, 1 }
 0x180   : > { %v962_v23 = vpop.f32.mrf.mxu1 }
 0x181   : > { %v991_v27 = vadd.f32 %v962_v23, %v906_v20  ;;  %v1004_v32 = vadd.f32 %v1000_v26, %v990_v25  ;;  %v1058_v25 = vld [vmem:[%s4237_s4] sm:$0xff] }
 0x183   : > { %v1005_v30 = vadd.f32 %v999_v15, %v991_v27  ;;  %v1012_v44 = vmax.f32 %v1004_v32, 0.0  ;;  %v1155_v32 = vld [vmem:[%s4238_s5 + $0x60] sm:$0xff] }
 0x185   : > { %v1013_v33 = vmax.f32 %v1005_v30, 0.0  ;;  %v1031_v56 = vrot.slane %v1012_v44, 1  ;;  %v1157_v30 = vld [vmem:[%s4238_s5 + $0x70] sm:$0xff] }
 0x186   : > { %v981_v36 = vpop.f32.mrf.mxu2 }
 0x187   : > { %v1029_v38 = vrot.slane %v1013_v33, 1  ;;  %v992_v39 = vadd.f32 %v981_v36, %v907_v34  ;;  %v1152_v36 = vld [vmem:[%s4238_s5 + $0x48] sm:$0xff] }
 0x188   : > { %v965_v43 = vpop.f32.mrf.mxu1 }
 0x189   : > { %v1006_v45 = vadd.f32 %v1000_v26, %v992_v39  ;;  %v993_v46 = vadd.f32 %v965_v43, %v908_v40  ;;  %v1030_v47 = vsel %vm743_vm5, %v1028_v37, %v1029_v38  ;;  %v1151_v37 = vld [vmem:[%s4238_s5 + $0x40] sm:$0xff]  ;;  %v1149_v40 = vld [vmem:[%s4238_s5 + $0x30] sm:$0xff]  ;;  %v1148_v43 = vld [vmem:[%s4238_s5 + $0x28] sm:$0xff] }
 0x18a   : > { %v1050_v51 = vmax.f32 %v1011_v29, %v1030_v47  ;;  %v1158_v29 = vld [vmem:[%s4238_s5 + $0x78] sm:$0xff] }
 0x18b   : > { %v1014_v54 = vmax.f32 %v1006_v45, 0.0  ;;  %v1007_v55 = vadd.f32 %v999_v15, %v993_v46  ;;  %1175 = vmatpush.msrb.mxu0 %v1158_v29  ;;  %v1147_v45 = vld [vmem:[%s4238_s5 + $0x20] sm:$0xff]  ;;  %v1162_v46 = vld [vmem:[%s4238_s5 + $0x98] sm:$0xff] }
 0x18c   : > { %v1146_v47 = vld [vmem:[%s4238_s5 + $0x18] sm:$0xff] }
 0x18d   : > { %v1032_v49 = vrot.slane %v1014_v54, 1  ;;  %v1015_v57 = vmax.f32 %v1007_v55, 0.0  ;;  %1176 = vmatpush.msrb.mxu0 %v1157_v30  ;;  %v1159_v55 = vld [vmem:[%s4238_s5 + $0x80] sm:$0xff] }
 0x18e   : > { %v984_v50 = vpop.f32.mrf.mxu2  ;;  %v3057_v30 = vld [vmem:[%s4239_s6 + $0x24] sm:$0xf] }
 0x18f   : > { %v1034_v59 = vrot.slane %v1015_v57, 1  ;;  %v994_v63 = vadd.f32 %v984_v50, %v909_v58  ;;  %v1033_v2 = vsel %vm743_vm5, %v1031_v56, %v1032_v49  ;;  %1177 = vmatpush.msrb.mxu0 %v1156_v31  ;;  %v1143_v56 = vld [vmem:[%s4238_s5] sm:$0xff]  ;;  %v2649_v31 = vld [vmem:[%s4239_s6 + $0x28] sm:$0xf0] }
 0x190   : > { %v967_v3 = vpop.f32.mrf.mxu1  ;;  %v1051_v4 = vmax.f32 %v1012_v44, %v1033_v2  ;;  %v1163_v44 = vld [vmem:[%s4238_s5 + $0xa0] sm:$0x3] }
 0x191   : > { %v1008_v7 = vadd.f32 %v1000_v26, %v994_v63  ;;  %v995_v1 = vadd.f32 %v967_v3, %v910_v0  ;;  %v1035_v8 = vsel %vm743_vm5, %v1029_v38, %v1034_v59  ;;  %1178 = vmatpush.msrb.mxu0 %v1155_v32  ;;  %v1150_v38 = vld [vmem:[%s4238_s5 + $0x38] sm:$0xff]  ;;  %2573 = vmatpush.msk.msrb.mxu1 %vm1171_vm8, %v1163_v44  ;;  %v3062_v63 = vld [vmem:[%s4239_s6 + $0x44] sm:$0xf0] }
 0x192   : > { %v1052_v9 = vmax.f32 %v1013_v33, %v1035_v8  ;;  %v1154_v33 = vld [vmem:[%s4238_s5 + $0x58] sm:$0xff]  ;;  %v3072_v8 = vld [vmem:[%s4239_s6 + $0x9c] sm:$0xf0] }
 0x193   : > { %v1016_v10 = vmax.f32 %v1008_v7, 0.0  ;;  %v1009_v11 = vadd.f32 %v999_v15, %v995_v1  ;;  %1179 = vmatpush.msrb.mxu0 %v1154_v33  ;;  %1210 = vmatpush.msrb.mxu1 %v1162_v46  ;;  %v2665_v7 = vld [vmem:[%s4239_s6 + $0x48] sm:$0xf0]  ;;  %v2621_v1 = vld [vmem:[%s4239_s6 + $0x98] sm:$0xf] }
 0x194   : > { %v2605_v32 = vld [vmem:[%s4239_s6 + $0x78] sm:$0xf] }
 0x195   : > { %v1036_v13 = vrot.slane %v1016_v10, 1  ;;  %v1017_v52 = vmax.f32 %v1009_v11, 0.0  ;;  %1180 = vmatpush.msrb.mxu0 %v1153_v35  ;;  %1211 = vmatpush.msrb.mxu1 %v1161_v48  ;;  %v3068_v35 = vld [vmem:[%s4239_s6 + $0x7c] sm:$0xf0] }
 0x196   : > { %v986_v14 = vpop.f32.mrf.mxu2 }
 0x197   : > { %v1038_v16 = vrot.slane %v1017_v52, 1  ;;  %v996_v17 = vadd.f32 %v986_v14, %v911_v62  ;;  %v1037_v18 = vsel %vm743_vm5, %v1032_v49, %v1036_v13  ;;  %1181 = vmatpush.msrb.mxu0 %v1152_v36  ;;  %1212 = vmatpush.msrb.mxu1 %v1160_v53  ;;  %v1231_v49 = vld [vmem:[%s4239_s6 + $0x50] sm:$0x33]  ;;  %v2668_v14 = vor.u32 %v3061_v6, %v2665_v7  ;;  %v3067_v36 = vld [vmem:[%s4239_s6 + $0x7c] sm:$0xf] }
 0x198   : > { %v1053_v19 = vmax.f32 %v1014_v54, %v1037_v18  ;;  %v1144_v54 = vld [vmem:[%s4238_s5 + $0x8] sm:$0xff]  ;;  %v1376_v58 = vunpack.c.l.b16 %v1231_v49  ;;  %v1377_v60 = vunpack.c.h.b16 %v1231_v49  ;;  %v2622_v18 = vor.u32 %v3072_v8, %v2621_v1  ;;  %v2639_v49 = vld [vmem:[%s4239_s6 + $0x10] sm:$0xf]  ;;  %v2589_v1 = vld [vmem:[%s4239_s6 + $0x58] sm:$0xf] }
 0x199   : > { %v1056_v20 = vmax.f32 %v1017_v52, %v1038_v16  ;;  %v1010_v5 = vadd.f32 %v1000_v26, %v996_v17  ;;  %v1039_v21 = vsel %vm743_vm5, %v1034_v59, %v1038_v16  ;;  %1182 = vmatpush.msrb.mxu0 %v1151_v37  ;;  %1213 = vmatpush.msrb.mxu1 %v1159_v55  ;;  %v2663_v59 = vld [vmem:[%s4239_s6 + $0x40] sm:$0xf]  ;;  %v2655_v16 = vld [vmem:[%s4239_s6 + $0x30] sm:$0xf]  ;;  %v3060_v17 = vld [vmem:[%s4239_s6 + $0x34] sm:$0xf0] }
 0x19a   : > { %v1054_v22 = vmax.f32 %v1015_v57, %v1039_v21  ;;  %v2586_v57 = vld [vmem:[%s4239_s6 + $0xa8] sm:$0x33]  ;;  %v1388_v0 = vpack.c.b16 %v1376_v58, %v1376_v58  ;;  %v1389_v2 = vpack.c.b16 %v1377_v60, %v1377_v60  ;;  %v2664_v62 = vor.u32 %v3062_v63, %v2663_v59  ;;  %v2607_v37 = vld [vmem:[%s4239_s6 + $0x80] sm:$0xf0]  ;;  %v3066_v58 = vld [vmem:[%s4239_s6 + $0x6c] sm:$0xf0] }
 0x19b   : > { %v1018_v23 = vmax.f32 %v1010_v5, 0.0  ;;  %2567 = vmatpush.msk.msrb.mxu3 %vm1067_vm6, %v1056_v20  ;;  %1183 = vmatpush.msrb.mxu0 %v1150_v38  ;;  %v1283_v61 = vunpack.c.l.b16 %v2586_v57  ;;  %v1284_v50 = vunpack.c.h.b16 %v2586_v57  ;;  %v3059_v20 = vld [vmem:[%s4239_s6 + $0x34] sm:$0xf]  ;;  %v2657_v5 = vld [vmem:[%s4239_s6 + $0x38] sm:$0xf0]  ;;  %v2610_v44 = vor.u32 %v3067_v36, %v2607_v37 }
 0x19c   : > { %v1403_v11 = vsel %vm1171_vm8, %v1388_v0, 0  ;;  %v1406_v12 = vsel %vm1171_vm8, %v1389_v2, 0  ;;  %v2613_v21 = vld [vmem:[%s4239_s6 + $0x88] sm:$0xf]  ;;  %v2599_v59 = vld [vmem:[%s4239_s6 + $0x70] sm:$0xf0] }
 0x19d   : > { %v1040_v15 = vrot.slane %v1018_v23, 1  ;;  %1087 = vmatpush.msrb.mxu3 %v1054_v22  ;;  %1184 = vmatpush.msrb.mxu0 %v1149_v40  ;;  %v1295_v3 = vpack.c.b16 %v1283_v61, %v1283_v61  ;;  %v3070_v22 = vld [vmem:[%s4239_s6 + $0x8c] sm:$0xf0]  ;;  %v2652_v40 = vor.u32 %v3057_v30, %v2649_v31  ;;  %v2631_v63 = vld [vmem:[%s4239_s6] sm:$0xf] }
 0x19e   : > { %1424 = vmatpush.bf16.msra.mxu1 %v1406_v12  ;;  %v3054_v2 = vld [vmem:[%s4239_s6 + $0x4] sm:$0xf0]  ;;  %v3064_v8 = vld [vmem:[%s4239_s6 + $0x5c] sm:$0xf0]  ;;  %v2734_v12 = vld [vmem:[%s4239_s6 + $0x158] sm:$0x33] }
 0x19f   : > { %v1057_v24 = vmax.f32 %v1018_v23, %v1040_v15  ;;  %1088 = vmatpush.msrb.mxu3 %v1052_v9  ;;  %v1041_v27 = vsel %vm743_vm5, %v1036_v13, %v1040_v15  ;;  %1185 = vmatpush.msrb.mxu0 %v1148_v43  ;;  %v3071_v9 = vld [vmem:[%s4239_s6 + $0x9c] sm:$0xf]  ;;  %v1312_v13 = vsel %vm1171_vm8, %v1295_v3, 0  ;;  %v3069_v23 = vld [vmem:[%s4239_s6 + $0x8c] sm:$0xf]  ;;  %v2606_v43 = vor.u32 %v3068_v35, %v2605_v32 }
 0x1a0   : > { %v1055_v26 = vmax.f32 %v1016_v10, %v1041_v27  ;;  %v2623_v10 = vld [vmem:[%s4239_s6 + $0xa0] sm:$0xf0]  ;;  %1319 = vmatpush.bf16.msrb.mxu2 %v1312_v13  ;;  %v2615_v15 = vld [vmem:[%s4239_s6 + $0x90] sm:$0xf0]  ;;  %v2647_v27 = vld [vmem:[%s4239_s6 + $0x20] sm:$0xf]  ;;  %v2632_v6 = vor.u32 %v3054_v2, %v2631_v63 }
 0x1a1   : > { %1089 = vmatpush.msrb.mxu3 %v1050_v51  ;;  %1186 = vmatpush.msrb.mxu0 %v1147_v45  ;;  %v1145_v51 = vld [vmem:[%s4238_s5 + $0x10] sm:$0xff]  ;;  %v2618_v29 = vor.u32 %v3069_v23, %v2615_v15  ;;  %v3053_v3 = vld [vmem:[%s4239_s6 + $0x4] sm:$0xf]  ;;  %v2769_v15 = vld [vmem:[%s4239_s6 + $0x148] sm:$0xf] }
 0x1a2   : > { %2568 = vmatmul.msk.f32.vlgmr.msrb.gmra.mxu3 %vm1060_vm7, %v1058_v25  ;;  %1425 = vmatpush.bf16.msra.mxu1 %v2668_v14  ;;  %v2681_v13 = vld [vmem:[%s4239_s6 + $0x100] sm:$0x33]  ;;  %v1593_v14 = vunpack.c.h.b16 %v2734_v12  ;;  %v3082_v30 = vld [vmem:[%s4239_s6 + $0xf4] sm:$0xf0]  ;;  %v2718_v35 = vld [vmem:[%s4239_s6 + $0xf8] sm:$0xf0] }
 0x1a3   : > { %2570 = vmatpush.msk.msra.mxu3 %vm1067_vm6, %v1057_v24  ;;  %1187 = vmatpush.msrb.mxu0 %v1146_v47  ;;  %v2656_v24 = vor.u32 %v3060_v17, %v2655_v16  ;;  %v1481_v16 = vunpack.c.l.b16 %v2681_v13  ;;  %v1482_v17 = vunpack.c.h.b16 %v2681_v13  ;;  %v2761_v36 = vld [vmem:[%s4239_s6 + $0x138] sm:$0xf]  ;;  %v2747_v2 = vld [vmem:[%s4239_s6 + $0x120] sm:$0xf0]  ;;  %v3083_v13 = vld [vmem:[%s4239_s6 + $0x10c] sm:$0xf] }
 0x1a4   : > { %1320 = vmatpush.bf16.msrb.mxu2 %v2622_v18 }
 0x1a5   : > { %1110 = vmatpush.msra.mxu3 %v1055_v26  ;;  %1188 = vmatpush.msrb.mxu0 %v1145_v51  ;;  %v3058_v26 = vld [vmem:[%s4239_s6 + $0x24] sm:$0xf0] }
 0x1a6   : > { %v2648_v38 = vor.u32 %v3058_v26, %v2647_v27  ;;  %v3091_v27 = vld [vmem:[%s4239_s6 + $0x14c] sm:$0xf] }
 0x1a7   : > { %1111 = vmatpush.msra.mxu3 %v1053_v19  ;;  %1189 = vmatpush.msrb.mxu0 %v1144_v54  ;;  %v2626_v19 = vor.u32 %v3071_v9, %v2623_v10  ;;  %v3063_v9 = vld [vmem:[%s4239_s6 + $0x5c] sm:$0xf]  ;;  %v2590_v10 = vor.u32 %v3064_v8, %v2589_v1 }
 0x1a9   : > { %1112 = vmatpush.msra.mxu3 %v1051_v4  ;;  %1190 = vmatpush.msrb.mxu0 %v1143_v56  ;;  %v1296_v4 = vpack.c.b16 %v1284_v50, %v1284_v50  ;;  %v3065_v50 = vld [vmem:[%s4239_s6 + $0x6c] sm:$0xf] }
 0x1aa   : > { %2569 = vmatmul.msk.f32.gmra.mxu3 %vm1060_vm7, %v1059_v28  ;;  %v2602_v0 = vor.u32 %v3065_v50, %v2599_v59  ;;  %v3086_v50 = vld [vmem:[%s4239_s6 + $0x11c] sm:$0xf0] }
 0x1ab   : > { %v1315_v52 = vsel %vm1171_vm8, %v1296_v4, 0  ;;  %1410 = vmatpush.bf16.msra.mxu0 %v1403_v11  ;;  %v2633_v4 = vld [vmem:[%s4239_s6 + $0x8] sm:$0xf0]  ;;  %v2591_v11 = vld [vmem:[%s4239_s6 + $0x60] sm:$0xf0] }
 0x1ac   : > { %1333 = vmatpush.bf16.msrb.mxu3 %v1315_v52  ;;  %v2636_v7 = vor.u32 %v3053_v3, %v2633_v4  ;;  %v2594_v52 = vor.u32 %v3063_v9, %v2591_v11  ;;  %v2692_v3 = vld [vmem:[%s4239_s6 + $0xc0] sm:$0xf]  ;;  %v3076_v4 = vld [vmem:[%s4239_s6 + $0xc4] sm:$0xf0] }
 0x1ad   : > { %v2737_v9 = vld [vmem:[%s4239_s6 + $0x108] sm:$0xf]  ;;  %v2693_v11 = vor.u32 %v3076_v4, %v2692_v3  ;;  %v2790_v4 = vld [vmem:[%s4239_s6 + $0x160] sm:$0xf] }
 0x1af   : > { %1411 = vmatpush.bf16.msra.mxu0 %v2664_v62  ;;  %v1592_v62 = vunpack.c.l.b16 %v2734_v12 }
 0x1b0   : > { %1334 = vmatpush.bf16.msrb.mxu3 %v2626_v19  ;;  %v1605_v19 = vpack.c.b16 %v1593_v14, %v1593_v14  ;;  %v3074_v14 = vld [vmem:[%s4239_s6 + $0xb4] sm:$0xf0] }
 0x1b1   : > { %v1604_v18 = vpack.c.b16 %v1592_v62, %v1592_v62  ;;  %v2684_v62 = vld [vmem:[%s4239_s6 + $0xb0] sm:$0xf] }
 0x1b2   : > { %2571 = vmatmul.msk.f32.vlgmr.msra.gmra.mxu3 %vm1060_vm7, %v1058_v25  ;;  %v2660_v25 = vor.u32 %v3059_v20, %v2657_v5  ;;  %v1493_v20 = vpack.c.b16 %v1481_v16, %v1481_v16  ;;  %v1494_v5 = vpack.c.b16 %v1482_v17, %v1482_v17  ;;  %v3073_v16 = vld [vmem:[%s4239_s6 + $0xb4] sm:$0xf]  ;;  %v2686_v17 = vld [vmem:[%s4239_s6 + $0xb8] sm:$0xf0] }
 0x1b3   : > { %1412 = vmatpush.bf16.msra.mxu0 %v2656_v24 }
 0x1b4   : > { %1426 = vmatpush.bf16.msra.mxu1 %v2660_v25  ;;  %1335 = vmatpush.bf16.msrb.mxu3 %v2618_v29  ;;  %v1509_v23 = vsel %vm1171_vm8, %v1493_v20, 0  ;;  %v1512_v24 = vsel %vm1171_vm8, %v1494_v5, 0  ;;  %v3092_v25 = vld [vmem:[%s4239_s6 + $0x14c] sm:$0xf0]  ;;  %v2685_v20 = vor.u32 %v3074_v14, %v2684_v62  ;;  %v2689_v5 = vor.u32 %v3073_v16, %v2686_v17 }
 0x1b5   : > { %v2770_v26 = vor.u32 %v3092_v25, %v2769_v15  ;;  %v2716_v29 = vld [vmem:[%s4239_s6 + $0xf0] sm:$0xf] }
 0x1b6   : > { %v2717_v32 = vor.u32 %v3082_v30, %v2716_v29 }
 0x1b7   : > { %1413 = vmatpush.bf16.msra.mxu0 %v2648_v38  ;;  %v3090_v38 = vld [vmem:[%s4239_s6 + $0x13c] sm:$0xf0] }
 0x1b8   : > { %1427 = vmatpush.bf16.msra.mxu1 %v2652_v40  ;;  %1336 = vmatpush.bf16.msrb.mxu3 %v2610_v44  ;;  %v3089_v40 = vld [vmem:[%s4239_s6 + $0x13c] sm:$0xf]  ;;  %v2762_v44 = vor.u32 %v3090_v38, %v2761_v36  ;;  %v2822_v36 = vld [vmem:[%s4239_s6 + $0x1a0] sm:$0xf] }
 0x1ba   : > { %2572 = vmatmul.msk.f32.gmra.mxu3 %vm1060_vm7, %v1059_v28  ;;  %v2614_v28 = vor.u32 %v3070_v22, %v2613_v21  ;;  %v1620_v21 = vsel %vm1171_vm8, %v1604_v18, 0  ;;  %v1623_v22 = vsel %vm1171_vm8, %v1605_v19, 0 }
 0x1bc   : > { %1321 = vmatpush.bf16.msrb.mxu2 %v2614_v28  ;;  %1337 = vmatpush.bf16.msrb.mxu3 %v2602_v0  ;;  %v2771_v28 = vld [vmem:[%s4239_s6 + $0x150] sm:$0xf0]  ;;  %v3085_v0 = vld [vmem:[%s4239_s6 + $0x11c] sm:$0xf] }
 0x1bd   : > { %v2774_v31 = vor.u32 %v3091_v27, %v2771_v28  ;;  %v2750_v8 = vor.u32 %v3085_v0, %v2747_v2  ;;  %v2800_v0 = vld [vmem:[%s4239_s6 + $0x178] sm:$0xf0] }
 0x1c0   : > { %1322 = vmatpush.bf16.msrb.mxu2 %v2606_v43  ;;  %1338 = vmatpush.bf16.msrb.mxu3 %v2594_v52  ;;  %v2763_v43 = vld [vmem:[%s4239_s6 + $0x140] sm:$0xf0]  ;;  %v2739_v52 = vld [vmem:[%s4239_s6 + $0x110] sm:$0xf0] }
 0x1c1   : > { %v2742_v19 = vor.u32 %v3083_v13, %v2739_v52 }
 0x1c4   : > { %1530 = vmatpush.bf16.msra.mxu3 %v1512_v24 }
 0x225   : > { %v3602_v34 = vpop.f32.mrf.mxu3 }
 0x226   : > { %1124 = vrot.lane.b32.xlu0 %v3602_v34, %s3249_s20 }
 0x22d   : > { %v3617_v39 = vpop.f32.mrf.mxu3 }
 0x22e   : > { %1128 = vrot.lane.b32.xlu1 %v3617_v39, %s3249_s20 }
 0x235   : > { %v3623_v41 = vpop.f32.mrf.mxu3 }
 0x236   : > { %1126 = vrot.lane.b32.xlu0 %v3623_v41, %s3249_s20 }
 0x23d   : > { %v3626_v42 = vpop.f32.mrf.mxu3 }
 0x23e   : > { %1130 = vrot.lane.b32.xlu1 %v3626_v42, %s3249_s20  ;;  %s3201_s20 = scalar_lea.hbm %s3200_s28, 1 }
 0x23f   : > { %p3202_p11 = scmp.ne.s32.totalorder %s3200_s28, %s3201_s20  ;;  %p3207_p1 = scmp.lt.s32.totalorder %s3205_s27, %s3201_s20 }
 0x241   : > { %p3203_p12 = pnand %p3202_p11, %p3374_p5  ;;  %p3208_p2 = por %p3207_p1, %p3206_p0 }
 0x243   : > { %p3204_p13 = pneg %p3203_p12 }
 0x245   : > { %p3209_p3 = pnand %p3208_p2, %p3204_p13 }
 0x298   : > { %v1125_v33 = vpop.permute.xlu0 %1124 }
 0x2a0   : > { %v1129_v45 = vpop.permute.xlu1 %1128 }
 0x2a8   : > { %v1127_v46 = vpop.permute.xlu0 %1126 }
 0x2a9   : > { %v1133_v47 = vsel %vm1132_vm9, %v1125_v33, %v1127_v46  ;;  %v1140_v48 = vmax.f32 %v3623_v41, %v1127_v46  ;;  %v3056_v41 = vld [vmem:[%s4239_s6 + $0x14] sm:$0xf0]  ;;  %v3081_v33 = vld [vmem:[%s4239_s6 + $0xf4] sm:$0xf]  ;;  %v2708_v46 = vld [vmem:[%s4239_s6 + $0xe0] sm:$0xf] }
 0x2aa   : > { %v1139_v51 = vmax.f32 %v3602_v34, %v1133_v47  ;;  %v3055_v34 = vld [vmem:[%s4239_s6 + $0x14] sm:$0xf]  ;;  %v2640_v57 = vor.u32 %v3056_v41, %v2639_v49  ;;  %v2721_v37 = vor.u32 %v3081_v33, %v2718_v35  ;;  %v3080_v47 = vld [vmem:[%s4239_s6 + $0xe4] sm:$0xf0]  ;;  %v3087_v49 = vld [vmem:[%s4239_s6 + $0x12c] sm:$0xf] }
 0x2ab   : > { %2574 = vmatmul.msk.f32.vlgmr.msrb.gmra.mxu1 %vm1164_vm10, %v1140_v48  ;;  %v3079_v48 = vld [vmem:[%s4239_s6 + $0xe4] sm:$0xf]  ;;  %v2755_v41 = vld [vmem:[%s4239_s6 + $0x130] sm:$0xf0] }
 0x2ac   : > { %1191 = vmatmul.f32.vlgmr.msrb.gmra.mxu0 %v1139_v51  ;;  %1531 = vmatpush.bf16.msra.mxu3 %v2721_v37  ;;  %v2709_v51 = vor.u32 %v3080_v47, %v2708_v46  ;;  %v3102_v37 = vld [vmem:[%s4239_s6 + $0x1a4] sm:$0xf0] }
 0x2ad   : > { %1414 = vmatpush.bf16.msra.mxu0 %v2640_v57  ;;  %v3078_v57 = vld [vmem:[%s4239_s6 + $0xd4] sm:$0xf0]  ;;  %v2823_v46 = vor.u32 %v3102_v37, %v2822_v36 }
 0x2b0   : > { %v1131_v53 = vpop.permute.xlu1 %1130 }
 0x2b1   : > { %v1134_v54 = vsel %vm1132_vm9, %v1129_v45, %v1131_v53  ;;  %v1142_v55 = vmax.f32 %v3626_v42, %v1131_v53  ;;  %v2641_v42 = vld [vmem:[%s4239_s6 + $0x18] sm:$0xf0]  ;;  %1415 = vmatpush.bf16.msra.mxu0 %v2632_v6  ;;  %v2766_v45 = vor.u32 %v3089_v40, %v2763_v43  ;;  %v2710_v53 = vld [vmem:[%s4239_s6 + $0xe8] sm:$0xf0]  ;;  %v3075_v6 = vld [vmem:[%s4239_s6 + $0xc4] sm:$0xf] }
 0x2b2   : > { %v1141_v56 = vmax.f32 %v3617_v39, %v1134_v54  ;;  %v2597_v39 = vld [vmem:[%s4239_s6 + $0x68] sm:$0xf]  ;;  %v2644_v60 = vor.u32 %v3055_v34, %v2641_v42  ;;  %v2700_v34 = vld [vmem:[%s4239_s6 + $0xd0] sm:$0xf]  ;;  %v3077_v42 = vld [vmem:[%s4239_s6 + $0xd4] sm:$0xf] }
 0x2b3   : > { %2575 = vmatmul.msk.f32.gmra.mxu1 %vm1164_vm10, %v1142_v55  ;;  %v2598_v61 = vor.u32 %v3066_v58, %v2597_v39  ;;  %v2753_v54 = vld [vmem:[%s4239_s6 + $0x128] sm:$0xf]  ;;  %v3088_v55 = vld [vmem:[%s4239_s6 + $0x12c] sm:$0xf0]  ;;  %v2758_v58 = vor.u32 %v3087_v49, %v2755_v41  ;;  %v2701_v59 = vor.u32 %v3078_v57, %v2700_v34  ;;  %v2806_v34 = vld [vmem:[%s4239_s6 + $0x180] sm:$0xf] }
 0x2b4   : > { %1194 = vmatmul.f32.gmra.mxu0 %v1141_v56  ;;  %1428 = vmatpush.bf16.msra.mxu1 %v2644_v60  ;;  %v2713_v56 = vor.u32 %v3079_v48, %v2710_v53  ;;  %v2754_v39 = vor.u32 %v3088_v55, %v2753_v54  ;;  %v2702_v60 = vld [vmem:[%s4239_s6 + $0xd8] sm:$0xf0]  ;;  %v2814_v48 = vld [vmem:[%s4239_s6 + $0x190] sm:$0xf]  ;;  %v3099_v53 = vld [vmem:[%s4239_s6 + $0x194] sm:$0xf] }
 0x2b5   : > { %1323 = vmatpush.bf16.msrb.mxu2 %v2598_v61  ;;  %1627 = vmatpush.bf16.msrb.mxu0 %v1620_v21  ;;  %v2745_v61 = vld [vmem:[%s4239_s6 + $0x118] sm:$0xf]  ;;  %v2705_v63 = vor.u32 %v3077_v42, %v2702_v60  ;;  %v2816_v54 = vld [vmem:[%s4239_s6 + $0x198] sm:$0xf0]  ;;  %v3098_v57 = vld [vmem:[%s4239_s6 + $0x184] sm:$0xf0] }
 0x2b6   : > { %1532 = vmatpush.bf16.msra.mxu3 %v2713_v56  ;;  %v2746_v1 = vor.u32 %v3086_v50, %v2745_v61  ;;  %v2819_v41 = vor.u32 %v3099_v53, %v2816_v54  ;;  %v3097_v42 = vld [vmem:[%s4239_s6 + $0x184] sm:$0xf]  ;;  %v2807_v60 = vor.u32 %v3098_v57, %v2806_v34  ;;  %v2798_v50 = vld [vmem:[%s4239_s6 + $0x170] sm:$0xf] }
 0x2b8   : > { %1429 = vmatpush.bf16.msra.mxu1 %v2636_v7  ;;  %v2694_v7 = vld [vmem:[%s4239_s6 + $0xc8] sm:$0xf0] }
 0x2b9   : > { %1324 = vmatpush.bf16.msrb.mxu2 %v2590_v10  ;;  %1628 = vmatpush.bf16.msrb.mxu0 %v2770_v26  ;;  %v3084_v10 = vld [vmem:[%s4239_s6 + $0x10c] sm:$0xf0]  ;;  %v2697_v12 = vor.u32 %v3075_v6, %v2694_v7  ;;  %v3094_v6 = vld [vmem:[%s4239_s6 + $0x164] sm:$0xf0] }
 0x2ba   : > { %1533 = vmatpush.bf16.msra.mxu3 %v2705_v63  ;;  %v2738_v18 = vor.u32 %v3084_v10, %v2737_v9  ;;  %v3095_v63 = vld [vmem:[%s4239_s6 + $0x174] sm:$0xf]  ;;  %v2791_v9 = vor.u32 %v3094_v6, %v2790_v4  ;;  %v1798_v6 = vld [vmem:[%s4241_s8] sm:$0x1f] }
 0x2bb   : > { %v2803_v3 = vor.u32 %v3095_v63, %v2800_v0 }
 0x2bc   : > { %1641 = vmatpush.bf16.msrb.mxu1 %v1623_v22 }
 0x2bd   : > { %1516 = vmatpush.bf16.msra.mxu2 %v1509_v23  ;;  %1629 = vmatpush.bf16.msrb.mxu0 %v2762_v44  ;;  %v2787_v23 = vld [vmem:[%s4239_s6 + $0x1b0] sm:$0x33]  ;;  %v3101_v44 = vld [vmem:[%s4239_s6 + $0x1a4] sm:$0xf] }
 0x2be   : > { %1534 = vmatpush.bf16.msra.mxu3 %v2697_v12  ;;  %v1701_v26 = vunpack.c.l.b16 %v2787_v23  ;;  %v1702_v28 = vunpack.c.h.b16 %v2787_v23 }
 0x2c0   : > { %1642 = vmatpush.bf16.msrb.mxu1 %v2774_v31  ;;  %v1713_v31 = vpack.c.b16 %v1701_v26, %v1701_v26  ;;  %v1766_v26 = vld [vmem:[%s4240_s7] sm:$0x3] }
 0x2c1   : > { %1517 = vmatpush.bf16.msra.mxu2 %v2717_v32  ;;  %1630 = vmatpush.bf16.msrb.mxu0 %v2754_v39  ;;  %v1714_v32 = vpack.c.b16 %v1702_v28, %v1702_v28  ;;  %v2808_v39 = vld [vmem:[%s4239_s6 + $0x188] sm:$0xf0]  ;;  %v1769_v36 = vperm.slane %v1766_v26, 1 }
 0x2c2   : > { %1535 = vmatpush.bf16.msra.mxu3 %v2689_v5  ;;  %v1729_v40 = vsel %vm1171_vm8, %v1713_v31, 0  ;;  %v2811_v61 = vor.u32 %v3097_v42, %v2808_v39 }
 0x2c3   : > { %v1732_v43 = vsel %vm1171_vm8, %v1714_v32, 0 }
 0x2c4   : > { %1643 = vmatpush.bf16.msrb.mxu1 %v2766_v45  ;;  %v2824_v45 = vld [vmem:[%s4239_s6 + $0x1a8] sm:$0xf0] }
 0x2c5   : > { %1518 = vmatpush.bf16.msra.mxu2 %v2709_v51  ;;  %1631 = vmatpush.bf16.msrb.mxu0 %v2746_v1  ;;  %v2827_v47 = vor.u32 %v3101_v44, %v2824_v45  ;;  %v3100_v51 = vld [vmem:[%s4239_s6 + $0x194] sm:$0xf0]  ;;  %v3093_v1 = vld [vmem:[%s4239_s6 + $0x164] sm:$0xf] }
 0x2c6   : > { %v2815_v49 = vor.u32 %v3100_v51, %v2814_v48 }
 0x2c8   : > { %1644 = vmatpush.bf16.msrb.mxu1 %v2758_v58 }
 0x2c9   : > { %1519 = vmatpush.bf16.msra.mxu2 %v2701_v59  ;;  %1632 = vmatpush.bf16.msrb.mxu0 %v2738_v18  ;;  %v3096_v59 = vld [vmem:[%s4239_s6 + $0x174] sm:$0xf0] }
 0x2ca   : > { %v2799_v2 = vor.u32 %v3096_v59, %v2798_v50 }
 0x2cc   : > { %1645 = vmatpush.bf16.msrb.mxu1 %v2750_v8  ;;  %v2792_v8 = vld [vmem:[%s4239_s6 + $0x168] sm:$0xf0] }
 0x2cd   : > { %1520 = vmatpush.bf16.msra.mxu2 %v2693_v11  ;;  %v2795_v10 = vor.u32 %v3093_v1, %v2792_v8  ;;  %v1876_v1 = vld [vmem:[%s4242_s9 + $0x70] sm:$0xff]  ;;  %v1875_v8 = vld [vmem:[%s4242_s9 + $0x68] sm:$0xff] }
 0x2d0   : > { %1646 = vmatpush.bf16.msrb.mxu1 %v2742_v19 }
 0x2d1   : > { %1521 = vmatpush.bf16.msra.mxu2 %v2685_v20 }
 0x328   : > { %v1215_v21 = vpop.f32.mrf.mxu1 }
 0x329   : > { %v1192_v22 = vpop.f32.mrf.mxu0 }
 0x32a   : > { %v1216_v25 = vadd.f32 %v1215_v21, %v1192_v22 }
 0x330   : > { %v1218_v15 = vpop.f32.mrf.mxu1 }
 0x331   : > { %v1195_v24 = vpop.f32.mrf.mxu0 }
 0x332   : > { %v1219_v27 = vadd.f32 %v1218_v15, %v1195_v24 }
 0x334   : > { %v3930_v29 = vpack.c.bf16 %v1219_v27, %v1216_v25 }
 0x336   : > { %2669 = vmatmul.msk.bf16.vlgmr.msra.gmra.mxu0 %vm1307_vm11, %v3930_v29  ;;  %2670 = vmatmul.msk.bf16.vlgmr.msra.gmra.mxu1 %vm1307_vm11, %v3930_v29  ;;  %v1248_v30 = vshll.u32 %v3930_v29, 16  ;;  %v1246_v33 = vshrl.u32 %v3930_v29, 16  ;;  %v1449_v7 = vrot.slane %v3930_v29, 1  ;;  %v1669_v11 = vrot.slane %v3930_v29, 2 }
 0x338   : > { %v1250_v35 = vrot.slane %v1248_v30, 1  ;;  %v1558_v55 = vrot.slane %v1246_v33, 1  ;;  %v1559_v56 = vrot.slane %v1248_v30, 2 }
 0x33a   : > { %v1251_v38 = vor.u32 %v1250_v35, %v1246_v33  ;;  %v1560_v58 = vor.u32 %v1559_v56, %v1558_v55  ;;  %v1768_v35 = vperm.slane %v1766_v26, 0  ;;  %v3106_v26 = vld [vmem:[%s4243_s10 + $0x18] sm:$0xff] }
 0x33c   : > { %2627 = vmatmul.msk.bf16.vlgmr.msrb.gmra.mxu2 %vm1307_vm11, %v1251_v38  ;;  %2628 = vmatmul.msk.bf16.vlgmr.msrb.gmra.mxu3 %vm1307_vm11, %v1251_v38 }
 0x33d   : > { %1736 = vmatpush.bf16.msrb.mxu2 %v1729_v40  ;;  %1750 = vmatpush.bf16.msrb.mxu3 %v1732_v43 }
 0x341   : > { %1737 = vmatpush.bf16.msrb.mxu2 %v2823_v46  ;;  %1751 = vmatpush.bf16.msrb.mxu3 %v2827_v47 }
 0x345   : > { %1738 = vmatpush.bf16.msrb.mxu2 %v2815_v49  ;;  %1752 = vmatpush.bf16.msrb.mxu3 %v2819_v41 }
 0x346   : > { %2775 = vmatmul.msk.bf16.vlgmr.msrb.gmra.mxu0 %vm1307_vm11, %v1560_v58  ;;  %2776 = vmatmul.msk.bf16.vlgmr.msrb.gmra.mxu1 %vm1307_vm11, %v1560_v58 }
 0x349   : > { %1739 = vmatpush.bf16.msrb.mxu2 %v2807_v60  ;;  %1753 = vmatpush.bf16.msrb.mxu3 %v2811_v61 }
 0x34c   : > { %2722 = vmatmul.msk.bf16.vlgmr.msra.gmra.mxu2 %vm1307_vm11, %v1449_v7  ;;  %2723 = vmatmul.msk.bf16.vlgmr.msra.gmra.mxu3 %vm1307_vm11, %v1449_v7  ;;  %v1877_v7 = vld [vmem:[%s4242_s9 + $0x78] sm:$0xff] }
 0x34d   : > { %1740 = vmatpush.bf16.msrb.mxu2 %v2799_v2  ;;  %1754 = vmatpush.bf16.msrb.mxu3 %v2803_v3 }
 0x351   : > { %1741 = vmatpush.bf16.msrb.mxu2 %v2791_v9  ;;  %1755 = vmatpush.bf16.msrb.mxu3 %v2795_v10  ;;  %v1874_v9 = vld [vmem:[%s4242_s9 + $0x60] sm:$0xff]  ;;  %v1873_v10 = vld [vmem:[%s4242_s9 + $0x58] sm:$0xff] }
 0x355   : > { %1884 = vmatpush.msra.mxu2 %v1877_v7  ;;  %v3132_v7 = vld [vmem:[%s4245_s12 + $0x20] sm:$0xff] }
 0x357   : > { %1885 = vmatpush.msra.mxu2 %v1876_v1  ;;  %v3131_v1 = vld [vmem:[%s4245_s12 + $0x18] sm:$0xff] }
 0x359   : > { %1886 = vmatpush.msra.mxu2 %v1875_v8  ;;  %v3130_v8 = vld [vmem:[%s4245_s12 + $0x10] sm:$0xff] }
 0x35b   : > { %1887 = vmatpush.msra.mxu2 %v1874_v9  ;;  %v3129_v9 = vld [vmem:[%s4245_s12 + $0x8] sm:$0xff] }
 0x35c   : > { %2828 = vmatmul.msk.bf16.vlgmr.msrb.gmra.mxu2 %vm1307_vm11, %v1669_v11  ;;  %2829 = vmatmul.msk.bf16.vlgmr.msrb.gmra.mxu3 %vm1307_vm11, %v1669_v11  ;;  %v1872_v11 = vld [vmem:[%s4242_s9 + $0x50] sm:$0xff] }
 0x35d   : > { %1888 = vmatpush.msra.mxu2 %v1873_v10 }
 0x35f   : > { %1889 = vmatpush.msra.mxu2 %v1872_v11  ;;  %v3128_v11 = vld [vmem:[%s4245_s12] sm:$0xff] }
 0x3b3   : > { %v1417_v52 = vpop.f32.mrf.mxu0  ;;  %v1431_v62 = vpop.f32.mrf.mxu1 }
 0x3bb   : > { %v1419_v19 = vpop.f32.mrf.mxu0  ;;  %v1433_v20 = vpop.f32.mrf.mxu1 }
 0x3bf   : > { %v1326_v12 = vpop.f32.mrf.mxu2  ;;  %v1340_v13 = vpop.f32.mrf.mxu3 }
 0x3c0   : > { %v1418_v22 = vadd.f32 %v1417_v52, %v1326_v12  ;;  %v1432_v23 = vadd.f32 %v1431_v62, %v1340_v13  ;;  %v1871_v12 = vld [vmem:[%s4242_s9 + $0x48] sm:$0xff]  ;;  %v1870_v13 = vld [vmem:[%s4242_s9 + $0x40] sm:$0xff]  ;;  %v1869_v52 = vld [vmem:[%s4242_s9 + $0x38] sm:$0xff] }
 0x3c1   : > { %1890 = vmatpush.msra.mxu2 %v1871_v12  ;;  %v1868_v62 = vld [vmem:[%s4242_s9 + $0x30] sm:$0xff] }
 0x3c3   : > { %v1634_v15 = vpop.f32.mrf.mxu0  ;;  %v1648_v24 = vpop.f32.mrf.mxu1  ;;  %1891 = vmatpush.msra.mxu2 %v1870_v13  ;;  %v2315_v13 = vld [vmem:[%s4247_s14 + $0x28] sm:$0x3] }
 0x3c5   : > { %1892 = vmatpush.msra.mxu2 %v1869_v52  ;;  %v2339_v52 = vunpack.c.l.b16 %v2315_v13 }
 0x3c7   : > { %v1328_v14 = vpop.f32.mrf.mxu2  ;;  %v1342_v16 = vpop.f32.mrf.mxu3  ;;  %1893 = vmatpush.msra.mxu2 %v1868_v62  ;;  %v2345_v62 = vpack.c.b16 %v2339_v52, %v2339_v52 }
 0x3c8   : > { %v1420_v30 = vadd.f32 %v1419_v19, %v1328_v14  ;;  %v1434_v31 = vadd.f32 %v1433_v20, %v1342_v16  ;;  %v1879_v19 = vld [vmem:[%s4242_s9 + $0x88] sm:$0xff]  ;;  %v1865_v20 = vld [vmem:[%s4242_s9 + $0x18] sm:$0xff] }
 0x3cb   : > { %v1636_v44 = vpop.f32.mrf.mxu0  ;;  %v1650_v45 = vpop.f32.mrf.mxu1 }
 0x3cf   : > { %v1523_v17 = vpop.f32.mrf.mxu2  ;;  %v1537_v18 = vpop.f32.mrf.mxu3 }
 0x3d0   : > { %v1542_v25 = vadd.f32 %v1523_v17, %v1418_v22  ;;  %v1543_v27 = vadd.f32 %v1537_v18, %v1432_v23  ;;  %v1867_v17 = vld [vmem:[%s4242_s9 + $0x28] sm:$0xff]  ;;  %v1866_v18 = vld [vmem:[%s4242_s9 + $0x20] sm:$0xff] }
 0x3d1   : > { %1894 = vmatpush.msra.mxu2 %v1867_v17  ;;  %v1878_v22 = vld [vmem:[%s4242_s9 + $0x80] sm:$0xff]  ;;  %v2355_v17 = vsel %vm1171_vm8, %v2345_v62, 0 }
 0x3d2   : > { %v1653_v32 = vadd.f32 %v1634_v15, %v1542_v25  ;;  %v1654_v33 = vadd.f32 %v1648_v24, %v1543_v27  ;;  %v1862_v23 = vld [vmem:[%s4242_s9] sm:$0xff]  ;;  %v3112_v24 = vld [vmem:[%s4243_s10 + $0x48] sm:$0xff]  ;;  %v3117_v25 = vld [vmem:[%s4243_s10 + $0x70] sm:$0xff] }
 0x3d3   : > { %1895 = vmatpush.msra.mxu2 %v1866_v18  ;;  %v3107_v15 = vld [vmem:[%s4243_s10 + $0x20] sm:$0xff]  ;;  %1986 = vmatpush.bf16.msra.mxu3 %v3112_v24 }
 0x3d4   : > { %v3127_v27 = vld [vmem:[%s4243_s10 + $0xc0] sm:$0xff] }
 0x3d5   : > { %1896 = vmatpush.msra.mxu2 %v1865_v20 }
 0x3d7   : > { %v1525_v5 = vpop.f32.mrf.mxu2  ;;  %v1539_v21 = vpop.f32.mrf.mxu3 }
 0x3d8   : > { %v1544_v37 = vadd.f32 %v1525_v5, %v1420_v30  ;;  %v1545_v38 = vadd.f32 %v1539_v21, %v1434_v31  ;;  %v1864_v5 = vld [vmem:[%s4242_s9 + $0x10] sm:$0xff]  ;;  %v1863_v21 = vld [vmem:[%s4242_s9 + $0x8] sm:$0xff]  ;;  %v3126_v30 = vld [vmem:[%s4243_s10 + $0xb8] sm:$0xff] }
 0x3d9   : > { %1897 = vmatpush.msra.mxu2 %v1864_v5  ;;  %v3138_v5 = vld [vmem:[%s4247_s14 + $0x18] sm:$0xff] }
 0x3da   : > { %v1655_v48 = vadd.f32 %v1636_v44, %v1544_v37  ;;  %v1656_v51 = vadd.f32 %v1650_v45, %v1545_v38  ;;  %v3105_v37 = vld [vmem:[%s4243_s10 + $0x10] sm:$0xff]  ;;  %v3110_v38 = vld [vmem:[%s4243_s10 + $0x38] sm:$0xff]  ;;  %v3104_v44 = vld [vmem:[%s4243_s10 + $0x8] sm:$0xff] }
 0x3db   : > { %1898 = vmatpush.msra.mxu2 %v1863_v21  ;;  %v3109_v45 = vld [vmem:[%s4243_s10 + $0x30] sm:$0xff] }
 0x3dd   : > { %1899 = vmatpush.msra.mxu2 %v1862_v23  ;;  %v3137_v23 = vld [vmem:[%s4247_s14 + $0x10] sm:$0xff] }
 0x3df   : > { %v1743_v28 = vpop.f32.mrf.mxu2  ;;  %v1757_v29 = vpop.f32.mrf.mxu3  ;;  %2208 = vmatpush.bf16.msrb.mxu2 %v3127_v27 }
 0x3e0   : > { %v1762_v40 = vadd.f32 %v1743_v28, %v1653_v32  ;;  %v1763_v43 = vadd.f32 %v1757_v29, %v1654_v33  ;;  %v3111_v28 = vld [vmem:[%s4243_s10 + $0x40] sm:$0xff]  ;;  %v3116_v29 = vld [vmem:[%s4243_s10 + $0x68] sm:$0xff] }
 0x3e1   : > { %1987 = vmatpush.bf16.msra.mxu3 %v3111_v28 }
 0x3e2   : > { %v1772_v46 = vadd.f32 %v1768_v35, %v1762_v40  ;;  %v1773_v47 = vadd.f32 %v1769_v36, %v1763_v43  ;;  %v3115_v40 = vld [vmem:[%s4243_s10 + $0x60] sm:$0xff]  ;;  %v3125_v43 = vld [vmem:[%s4243_s10 + $0xb0] sm:$0xff] }
 0x3e3   : > { %2209 = vmatpush.bf16.msrb.mxu2 %v3126_v30 }
 0x3e4   : > { %v1776_v49 = vmax.f32 %v1772_v46, 0.0  ;;  %v1777_v41 = vmax.f32 %v1773_v47, 0.0  ;;  %v3114_v46 = vld [vmem:[%s4243_s10 + $0x58] sm:$0xff]  ;;  %v3124_v47 = vld [vmem:[%s4243_s10 + $0xa8] sm:$0xff] }
 0x3e5   : > { %1988 = vmatpush.bf16.msra.mxu3 %v3110_v38 }
 0x3e6   : > { %v1784_v58 = vrot.slane %v1776_v49, 1  ;;  %v1787_v60 = vrot.slane %v1777_v41, 1 }
 0x3e7   : > { %v1745_v53 = vpop.f32.mrf.mxu2  ;;  %v1759_v54 = vpop.f32.mrf.mxu3  ;;  %2210 = vmatpush.bf16.msrb.mxu2 %v3125_v43 }
 0x3e8   : > { %v1764_v55 = vadd.f32 %v1745_v53, %v1655_v48  ;;  %v1765_v56 = vadd.f32 %v1759_v54, %v1656_v51  ;;  %v3103_v48 = vld [vmem:[%s4243_s10] sm:$0xff]  ;;  %v3108_v51 = vld [vmem:[%s4243_s10 + $0x28] sm:$0xff]  ;;  %v3113_v53 = vld [vmem:[%s4243_s10 + $0x50] sm:$0xff] }
 0x3e9   : > { %1989 = vmatpush.bf16.msra.mxu3 %v3109_v45  ;;  %v3122_v54 = vld [vmem:[%s4243_s10 + $0x98] sm:$0xff]  ;;  %v2317_v45 = vld [vmem:[%s4248_s15] sm:$0x1] }
 0x3ea   : > { %v1774_v34 = vadd.f32 %v1768_v35, %v1764_v55  ;;  %v1775_v57 = vadd.f32 %v1769_v36, %v1765_v56  ;;  %v3123_v55 = vld [vmem:[%s4243_s10 + $0xa0] sm:$0xff]  ;;  %v3121_v56 = vld [vmem:[%s4243_s10 + $0x90] sm:$0xff] }
 0x3eb   : > { %2211 = vmatpush.bf16.msrb.mxu2 %v3124_v47 }
 0x3ec   : > { %v1778_v42 = vmax.f32 %v1774_v34, 0.0  ;;  %v1779_v39 = vmax.f32 %v1775_v57, 0.0  ;;  %v3118_v34 = vld [vmem:[%s4243_s10 + $0x78] sm:$0xff] }
 0x3ed   : > { %1990 = vmatpush.bf16.msra.mxu3 %v3108_v51 }
 0x3ee   : > { %v1785_v61 = vrot.slane %v1778_v42, 1  ;;  %v1788_v50 = vrot.slane %v1779_v39, 1 }
 0x3ef   : > { %2212 = vmatpush.bf16.msrb.mxu2 %v3123_v55 }
 0x3f0   : > { %v1796_v59 = vmax.f32 %v1778_v42, %v1785_v61  ;;  %v1797_v63 = vmax.f32 %v1779_v39, %v1788_v50  ;;  %v1786_v0 = vsel %vm743_vm5, %v1784_v58, %v1785_v61  ;;  %v1789_v2 = vsel %vm743_vm5, %v1787_v60, %v1788_v50 }
 0x3f1   : > { %v1794_v3 = vmax.f32 %v1776_v49, %v1786_v0  ;;  %v1795_v4 = vmax.f32 %v1777_v41, %v1789_v2  ;;  %2149 = vmatpush.bf16.msrb.mxu3 %v3122_v54  ;;  %v3120_v49 = vld [vmem:[%s4243_s10 + $0x88] sm:$0xff]  ;;  %v3119_v41 = vld [vmem:[%s4243_s10 + $0x80] sm:$0xff] }
 0x3f2   : > { %2830 = vmatpush.msk.msra.mxu0 %vm1803_vm12, %v1796_v59  ;;  %2832 = vmatpush.msk.msra.mxu1 %vm1803_vm12, %v1797_v63  ;;  %v2236_v63 = vld [vmem:[%s4245_s12 + $0x38] sm:$0xf] }
 0x3f3   : > { %v2268_v0 = vunpack.c.l.b16 %v2236_v63 }
 0x3f4   : > { %1825 = vmatpush.msra.mxu0 %v1794_v3  ;;  %1845 = vmatpush.msra.mxu1 %v1795_v4  ;;  %v3134_v4 = vld [vmem:[%s4245_s12 + $0x30] sm:$0xff] }
 0x3f5   : > { %2831 = vmatmul.msk.f32.vlgmr.msra.gmra.mxu0 %vm1799_vm13, %v1798_v6  ;;  %2833 = vmatmul.msk.f32.vlgmr.msra.gmra.mxu1 %vm1799_vm13, %v1798_v6  ;;  %v2276_v2 = vpack.c.b16 %v2268_v0, %v2268_v0  ;;  %v3133_v6 = vld [vmem:[%s4245_s12 + $0x28] sm:$0xff] }
 0x3f6   : > { %1918 = vmatpush.msrb.mxu0 %v1879_v19  ;;  %2031 = vmatpush.bf16.msrb.mxu1 %v3107_v15  ;;  %v3139_v19 = vld [vmem:[%s4247_s14 + $0x20] sm:$0xff] }
 0x3f7   : > { %2150 = vmatpush.bf16.msrb.mxu3 %v3121_v56  ;;  %v2289_v3 = vsel %vm541_vm0, %v2276_v2, 0  ;;  %vm2284_vm0 = vcmask 982016  }
 0x3f8   : > { %1919 = vmatpush.msrb.mxu0 %v1878_v22 }
 0x3fa   : > { %2090 = vmatpush.bf16.msra.mxu0 %v3117_v25  ;;  %2032 = vmatpush.bf16.msrb.mxu1 %v3106_v26  ;;  %v2219_v26 = vld [vmem:[%s4244_s11] sm:$0x1] }
 0x3fb   : > { %2151 = vmatpush.bf16.msrb.mxu3 %v3120_v49 }
 0x3fe   : > { %2091 = vmatpush.bf16.msra.mxu0 %v3116_v29  ;;  %2033 = vmatpush.bf16.msrb.mxu1 %v3105_v37 }
 0x3ff   : > { %2152 = vmatpush.bf16.msrb.mxu3 %v3119_v41 }
 0x402   : > { %2092 = vmatpush.bf16.msra.mxu0 %v3115_v40  ;;  %2034 = vmatpush.bf16.msrb.mxu1 %v3104_v44 }
 0x403   : > { %2153 = vmatpush.bf16.msrb.mxu3 %v3118_v34 }
 0x406   : > { %2093 = vmatpush.bf16.msra.mxu0 %v3114_v46  ;;  %2035 = vmatpush.bf16.msrb.mxu1 %v3103_v48 }
 0x40a   : > { %2094 = vmatpush.bf16.msra.mxu0 %v3113_v53  ;;  %2291 = vmatpush.bf16.msra.mxu1 %v2289_v3 }
 0x40e   : > { %2292 = vmatpush.bf16.msra.mxu1 %v3134_v4 }
 0x412   : > { %2293 = vmatpush.bf16.msra.mxu1 %v3133_v6 }
 0x416   : > { %2294 = vmatpush.bf16.msra.mxu1 %v3132_v7 }
 0x41a   : > { %2295 = vmatpush.bf16.msra.mxu1 %v3131_v1 }
 0x41e   : > { %2296 = vmatpush.bf16.msra.mxu1 %v3130_v8 }
 0x422   : > { %2297 = vmatpush.bf16.msra.mxu1 %v3129_v9 }
 0x426   : > { %2298 = vmatpush.bf16.msra.mxu1 %v3128_v11 }
 0x472   : > { %v1827_v14 = vpop.f32.mrf.mxu0  ;;  %v1847_v16 = vpop.f32.mrf.mxu1 }
 0x473   : > { %1852 = vrot.lane.b32.xlu2 %v1827_v14, %s3250_s30 }
 0x47b   : > { %1854 = vrot.lane.b32.xlu2 %v1847_v16, %s3250_s30  ;;  %s2373_s30 = scalar_lea.sflag [#allocation3], %s512_s29 }
 0x4cd   : > { %v1853_v31 = vpop.permute.xlu2 %1852 }
 0x4d5   : > { %v1855_v32 = vpop.permute.xlu2 %1854 }
 0x4d6   : > { %v1857_v33 = vsel %vm1856_vm14, %v1853_v31, %v1855_v32  ;;  %v1861_v35 = vmax.f32 %v1847_v16, %v1855_v32 }
 0x4d7   : > { %v1860_v36 = vmax.f32 %v1827_v14, %v1857_v33  ;;  %v3136_v33 = vld [vmem:[%s4247_s14 + $0x8] sm:$0xff] }
 0x4d8   : > { %2834 = vmatmul.msk.f32.vlgmr.msrb.gmra.mxu0 %vm1880_vm15, %v1861_v35  ;;  %v3135_v35 = vld [vmem:[%s4247_s14] sm:$0xff] }
 0x4d9   : > { %1900 = vmatmul.f32.vlgmr.msra.gmra.mxu2 %v1860_v36  ;;  %2359 = vmatpush.bf16.msrb.mxu0 %v2355_v17  ;;  %v2238_v36 = vld [vmem:[%s4246_s13] sm:$0x1] }
 0x4dd   : > { %2360 = vmatpush.bf16.msrb.mxu0 %v3139_v19 }
 0x4e1   : > { %2361 = vmatpush.bf16.msrb.mxu0 %v3138_v5 }
 0x4e5   : > { %2362 = vmatpush.bf16.msrb.mxu0 %v3137_v23 }
 0x4e9   : > { %2363 = vmatpush.bf16.msrb.mxu0 %v3136_v33 }
 0x4ed   : > { %2364 = vmatpush.bf16.msrb.mxu0 %v3135_v35 }
 0x555   : > { %v1921_v57 = vpop.f32.mrf.mxu0 }
 0x55c   : > { %v1901_v42 = vpop.f32.mrf.mxu2 }
 0x55d   : > { %v1922_v39 = vadd.f32 %v1921_v57, %v1901_v42 }
 0x55f   : > { %v1934_v58 = vpack.c.bf16 %v1922_v39, %v1922_v39 }
 0x561   : > { %v1947_v60 = vshrl.u32 %v1934_v58, 16  ;;  %v2053_v61 = vrot.slane %v1934_v58, 1  ;;  %v2171_v50 = vrot.slane %v1934_v58, 2  ;;  %2886 = vmatmul.msk.bf16.vlgmr.msrb.gmra.mxu1 %vm1979_vm1, %v1934_v58 }
 0x563   : > { %2865 = vmatmul.msk.bf16.vlgmr.msra.gmra.mxu3 %vm1979_vm1, %v1947_v60  ;;  %2917 = vmatmul.msk.bf16.vlgmr.msra.gmra.mxu0 %vm1979_vm1, %v2053_v61  ;;  %v2112_v59 = vrot.slane %v1947_v60, 1 }
 0x564   : > { %2979 = vmatmul.msk.bf16.vlgmr.msrb.gmra.mxu2 %vm1979_vm1, %v2171_v50 }
 0x573   : > { %2948 = vmatmul.msk.bf16.vlgmr.msrb.gmra.mxu3 %vm1979_vm1, %v2112_v59 }
 0x5de   : > { %v2037_v10 = vpop.f32.mrf.mxu1 }
 0x5e0   : > { %v2096_v12 = vpop.f32.mrf.mxu0 }
 0x5e6   : > { %v1992_v14 = vpop.f32.mrf.mxu3  ;;  %v2039_v16 = vpop.f32.mrf.mxu1 }
 0x5e7   : > { %v2214_v18 = vpop.f32.mrf.mxu2  ;;  %v2038_v15 = vadd.f32 %v2037_v10, %v1992_v14 }
 0x5e8   : > { %v2098_v20 = vpop.f32.mrf.mxu0 }
 0x5e9   : > { %v2100_v24 = vadd.f32 %v2096_v12, %v2038_v15 }
 0x5ee   : > { %v1994_v21 = vpop.f32.mrf.mxu3 }
 0x5ef   : > { %v2216_v22 = vpop.f32.mrf.mxu2 }
 0x5f6   : > { %v2155_v25 = vpop.f32.mrf.mxu3 }
 0x5f7   : > { %v2159_v27 = vadd.f32 %v2155_v25, %v2100_v24 }
 0x5f9   : > { %v2218_v28 = vadd.f32 %v2214_v18, %v2159_v27 }
 0x5fb   : > { %v2220_v29 = vadd.f32 %v2219_v26, %v2218_v28 }
 0x5fd   : > { %v2221_v30 = vmax.f32 %v2220_v29, 0.0 }
 0x5fe   : > { %v2157_v31 = vpop.f32.mrf.mxu3 }
 0x5ff   : > { %v2237_v32 = vpack.c.bf16 %v2221_v30, %v2221_v30 }
 0x601   : > { %3008 = vmatmul.msk.bf16.vlgmr.msra.gmra.mxu1 %vm2284_vm0, %v2237_v32 }
 0x67e   : > { %v2300_v37 = vpop.f32.mrf.mxu1 }
 0x67f   : > { %v2301_v38 = vadd.f32 %v2300_v37, %v2238_v36 }
 0x681   : > { %v2304_v40 = vmax.f32 %v2301_v38, 0.0 }
 0x683   : > { %v2316_v43 = vpack.c.bf16 %v2304_v40, %v2304_v40 }
 0x685   : > { %3029 = vmatmul.msk.bf16.vlgmr.msrb.gmra.mxu0 %vm1307_vm11, %v2316_v43 }
 0x686   : > { %v2302_v44 = vpop.f32.mrf.mxu1 }
 0x702   : > { %v2366_v46 = vpop.f32.mrf.mxu0 }
 0x703   : > { %v2367_v47 = vadd.f32 %v2366_v46, %v2317_v45 }
 0x705   : > { %2371 = vst.msk [vmem:[%s513_s26] sm:$0x1] %vm2370_vm2, %v2367_v47 }
 0x706   : > { %3212 = shalt.err (!%p3209_p3)
}
 0x707   : > { %3144 = dma.vmem_to_hbm [thread:$0]  (%p3374_p5), %s2384_s23, 16, %s2386_s1, %s2373_s30  }
 0x70a   : > { %v2368_v48 = vpop.f32.mrf.mxu0 }
 0x70b PF: > { %p3150_p4 = scmp.ge.s32.totalorder %s3247_s24, 2  ;;  %s2397_s19 = sand.u32 1, %s3235_s21  }
 0x70c   : > { %s2398_s26 = scalar_lea.sflag [#allocation3], %s2397_s19 }
 0x70d   : > { %p3147_p7 = pnand %p3150_p4, %p3378_p6 }
 0x70f   : > { %p3148_p8 = pneg %p3147_p7 }
 0x711   : > { %3230 = dma.done.wait (%p3148_p8), %s2398_s26, 16  }
 0x712   : > { %3232 = vsyncadd (%p3148_p8), %s2398_s26, 4294967280  ;;  %s4267_s24 = sld [smem:[#allocation6_spill]]  ;;  %s4270_s21 = smov %s3239_s22 }
 0x713   : > { %s4268_s28 = sld [smem:[#allocation5_spill]] }
 0x714   : > { %s4269_s23 = sld [smem:[#allocation7_spill]] }
 0x718   : > { %p26_p9 = scmp.ge.s32.totalorder %s4267_s24, 4  }
 0x719   : > { %s4271_s22 = smov %s4268_s28 }
 0x71a   :  { %28 = sbr.rel (!%p26_p9) target bundleno = 7 (0x7), region = 131 }
 0x71f   :  { %2403 = vsyncpa [#allocation3], 1 }
 0x720   :  { %2405 = vsyncpa [#allocation3 + $0x1], 1 }

</bundles_post_ra>
